<compile_context>
chip_gen: v5e
topology: v5e:2x2
jax: 0.10.0
libtpu: 0.0.40
codegen_flags: <defaults>
</compile_context>

<pallas_src>
import functools

import jax
import jax.numpy as jnp
import numpy as np
from jax import lax
from jax.experimental import pallas as pl
from jax.experimental.pallas import tpu as pltpu


def _round_up(x, m):
  return (x + m - 1) // m * m


def _gru_recurrent_kernel(gx_ref, h0_ref, whh_ref, bx_ref, bhn_ref,   # inputs
                          y_ref, hT_ref,                              # outputs
                          h_scr,                                      # scratch
                          *, hidden_pad, chunk, seq_len, unroll):
  """Recurrent part of one GRU layer.

  Grid: (batch blocks [parallel], time chunks [arbitrary/sequential]).
  gx_ref:  (chunk, Bb, 3Hp)  f32 or bf16  precomputed x @ W_ih^T (no bias)
  h0_ref:  (Bb, Hp)          f32          initial hidden state
  whh_ref: (Hp, 3Hp)         compute dtype (f32 or bf16)
  bx_ref:  (1, 3Hp)          f32          folded input bias (b_ih + b_hh for
                                          r/z, b_in for n)
  bhn_ref: (1, Hp)           f32          hidden bias of the 'n' gate
  y_ref:   (chunk, Bb, Hp)                per-step hidden states
  hT_ref:  (Bb, Hp)          f32          final hidden state (last chunk)
  h_scr:   (Bb, Hp)          f32          resident recurrence state
  """
  Hp = hidden_pad
  c = pl.program_id(1)

  @pl.when(c == 0)
  def _():
    h_scr[...] = h0_ref[...].astype(jnp.float32)

  Bb = h0_ref.shape[0]
  whh = whh_ref[...]
  # Hoist bias broadcasts out of the time loop (JAX does not CSE broadcasts).
  bx = jnp.broadcast_to(bx_ref[...].astype(jnp.float32), (Bb, 3 * Hp))
  bhn = jnp.broadcast_to(bhn_ref[...].astype(jnp.float32), (Bb, Hp))
  t0 = c * chunk
  needs_mask = (seq_len % chunk) != 0   # static

  def step(i, h):
    # Upcast (if bf16-streamed) and add the folded bias in-kernel (VMEM).
    gx = gx_ref[i].astype(jnp.float32) + bx                    # (Bb, 3Hp) f32
    # Recurrent matmul on the MXU (bf16 operands on bf16 path, f32 accum).
    gh = jnp.dot(h.astype(whh.dtype), whh,
                 preferred_element_type=jnp.float32)           # (Bb, 3Hp) f32
    # Hp is a multiple of 128 -> lane-aligned gate slices, unmasked stores.
    r = jax.nn.sigmoid(gx[:, 0 * Hp:1 * Hp] + gh[:, 0 * Hp:1 * Hp])
    z = jax.nn.sigmoid(gx[:, 1 * Hp:2 * Hp] + gh[:, 1 * Hp:2 * Hp])
    n = jnp.tanh(gx[:, 2 * Hp:3 * Hp] + r * (gh[:, 2 * Hp:3 * Hp] + bhn))
    h_new = n + z * (h - n)
    if needs_mask:                      # static; only the tail chunk pays it
      h_new = jnp.where(t0 + i < seq_len, h_new, h)
    y_ref[i] = h_new.astype(y_ref.dtype)
    return h_new

  h = lax.fori_loop(0, chunk, step, h_scr[...], unroll=unroll)
  h_scr[...] = h

  @pl.when(c == pl.num_programs(1) - 1)
  def _():
    hT_ref[...] = h


def gru_layer_forward(x_pad, h0_pad, w_ih, w_hh, b_ih, b_hh, *,
                      hidden_size, hidden_pad, seq_len, chunk,
                      compute_dtype=jnp.float32, unroll=8, batch_block=None):
  """One forward GRU layer over a (time-padded, batch-padded) sequence.

  x_pad:  (T_pad, Bp, Din) time-major, zero-padded input (Din may exceed the
          layer's nominal input size; extra columns are ignored via zero cols
          in the padded W_ih).
  h0_pad: (Bp, Hp) float32 initial hidden state (zero-padded).
  Returns (y (T_pad, Bp, Hp), h_final (Bp, Hp) float32) — still padded.
  """
  T_pad, Bp, Din = x_pad.shape
  H, Hp = hidden_size, hidden_pad
  D = w_ih.shape[1]
  Bb = Bp if batch_block is None else batch_block
  assert Bp % Bb == 0 and T_pad % chunk == 0

  gx_dtype = jnp.float32 if compute_dtype == jnp.float32 else compute_dtype

  # --- per-gate padding of weights / biases to Hp lanes (zeros) -------------
  wih = jnp.asarray(w_ih, jnp.float32).reshape(3, H, D)
  wih = jnp.pad(wih, ((0, 0), (0, Hp - H), (0, Din - D)))
  wih_t = wih.reshape(3 * Hp, Din).T.astype(compute_dtype)      # (Din, 3Hp)

  whh = jnp.asarray(w_hh, jnp.float32).reshape(3, H, H)
  whh = jnp.pad(whh, ((0, 0), (0, Hp - H), (0, Hp - H)))
  whh_t = whh.reshape(3 * Hp, Hp).T.astype(compute_dtype)       # (Hp, 3Hp)

  bih = jnp.asarray(b_ih, jnp.float32).reshape(3, H)
  bhh = jnp.asarray(b_hh, jnp.float32).reshape(3, H)
  # Fold b_hh into the input bias for r/z; keep b_hn separate (it must stay
  # inside r * (W_hn h + b_hn)).
  bx = jnp.concatenate([bih[:2] + bhh[:2], bih[2:3]], axis=0)    # (3, H)
  bx = jnp.pad(bx, ((0, 0), (0, Hp - H))).reshape(1, 3 * Hp)
  bhn = jnp.pad(bhh[2], (0, Hp - H)).reshape(1, Hp)

  # --- hoisted input projection: one big MXU-dense GEMM over all timesteps --
  # Bias is added inside the kernel (gx chunk already resident in VMEM), so no
  # extra HBM pass over the (T,B,3Hp) tensor; bf16 storage on the bf16 path
  # halves the streamed bytes.
  gx = jnp.einsum('tbd,dg->tbg', x_pad.astype(compute_dtype), wih_t,
                  preferred_element_type=jnp.float32).astype(gx_dtype)

  n_chunks = T_pad // chunk
  kernel = functools.partial(_gru_recurrent_kernel, hidden_pad=Hp,
                             chunk=chunk, seq_len=seq_len,
                             unroll=max(1, min(unroll, chunk)))

  y, h_final = pl.pallas_call(
      kernel,
      out_shape=(
          jax.ShapeDtypeStruct((T_pad, Bp, Hp), x_pad.dtype),   # per-step h
          jax.ShapeDtypeStruct((Bp, Hp), jnp.float32),          # final h
      ),
      grid_spec=pltpu.PrefetchScalarGridSpec(
          num_scalar_prefetch=0,
          grid=(Bp // Bb, n_chunks),              # (batch blocks, time chunks)
          in_specs=[
              pl.BlockSpec((chunk, Bb, 3 * Hp), lambda b, c: (c, b, 0)),  # gx
              pl.BlockSpec((Bb, Hp), lambda b, c: (b, 0)),                # h0
              pl.BlockSpec((Hp, 3 * Hp), lambda b, c: (0, 0)),            # Whh^T
              pl.BlockSpec((1, 3 * Hp), lambda b, c: (0, 0)),             # bx
              pl.BlockSpec((1, Hp), lambda b, c: (0, 0)),                 # bhn
          ],
          out_specs=(
              pl.BlockSpec((chunk, Bb, Hp), lambda b, c: (c, b, 0)),      # y
              pl.BlockSpec((Bb, Hp), lambda b, c: (b, 0)),                # hT
          ),
          scratch_shapes=[pltpu.VMEM((Bb, Hp), jnp.float32)],
      ),
      compiler_params=pltpu.CompilerParams(
          # Batch blocks are independent (megacore-shardable on v7x); the time
          # recurrence is inherently sequential.
          dimension_semantics=("parallel", "arbitrary"),
          vmem_limit_bytes=64 * 1024 * 1024),
  )(gx, h0_pad, whh_t, bx, bhn)
  return y, h_final


def stacked_gru_forward(inputs_btd, params, initial_state=None, *,
                        compute_dtype=jnp.float32, chunk=32,
                        vmem_budget_bytes=24 * 1024 * 1024, batch_block=None):
  """StackedGru.forward (stack_mode=None, all-'forward' layers, batch_first=True).

  inputs_btd: (B, T, D) batch-first input
  params: list of per-layer dicts {'w_ih','w_hh','b_ih','b_hh'}
  initial_state: optional (num_layers, B, H)
  returns (output (B, T, H_last), final_hidden (num_layers, B, H) float32)
  """
  B, T, _ = inputs_btd.shape
  Hs = [p["w_hh"].shape[1] for p in params]
  Hps = [_round_up(H, 128) for H in Hs]

  # Sublane-align batch (8 for f32 operands, 16 for bf16-packed gx).
  b_mult = 16 if compute_dtype == jnp.bfloat16 else 8
  Bp = _round_up(B, b_mult)
  if batch_block is not None:
    Bp = _round_up(Bp, batch_block)

  # Derive the time-chunk length from a VMEM budget so the double-buffered
  # gx+y blocks fit on every generation (incl. v7x's 64 MiB/TC).
  gx_bytes = 2 if compute_dtype == jnp.bfloat16 else 4
  y_bytes = jnp.dtype(inputs_btd.dtype).itemsize
  per_t = max(Bp * (3 * Hp * gx_bytes + Hp * y_bytes) for Hp in Hps)
  Tc = int(max(1, min(chunk, T, vmem_budget_bytes // (2 * per_t))))
  T_pad = pl.cdiv(T, Tc) * Tc

  # Pad the (small) input once, before the hoisted GEMM — never the big gx.
  x = jnp.transpose(inputs_btd, (1, 0, 2))                     # (T, B, D)
  x = jnp.pad(x, ((0, T_pad - T), (0, Bp - B), (0, 0)))        # (T_pad, Bp, D)

  finals = []
  for li, p in enumerate(params):
    H, Hp = Hs[li], Hps[li]
    if initial_state is None:
      h0 = jnp.zeros((Bp, Hp), jnp.float32)
    else:
      h0 = jnp.pad(jnp.asarray(initial_state[li], jnp.float32),
                   ((0, Bp - B), (0, Hp - H)))
    y, h_last = gru_layer_forward(
        x, h0, p["w_ih"], p["w_hh"], p["b_ih"], p["b_hh"],
        hidden_size=H, hidden_pad=Hp, seq_len=T, chunk=Tc,
        compute_dtype=compute_dtype, batch_block=batch_block)
    finals.append(h_last[:B, :H])            # un-pad the final hidden state
    # Inter-layer activations stay time-major and hidden-padded (the padded
    # columns are exactly zero, and the next layer's W_ih gets zero columns).
    x = y
    # TODO(synk): wavefront-pipeline the layer stack (overlap layer l+1's gx
    # GEMM with layer l's serial recurrence) instead of layer-at-a-time.

  output = jnp.transpose(x[:T, :B, :Hs[-1]], (1, 0, 2))        # (B, T, H_last)
  final_hidden = jnp.stack(finals, axis=0)                     # (L, B, H)
  return output, final_hidden


def _gru_reference(inputs_btd, params, initial_state=None):
  """Pure-JAX float32 reference (lax.scan) for correctness checking."""
  B, T, _ = inputs_btd.shape
  x = jnp.transpose(inputs_btd, (1, 0, 2)).astype(jnp.float32)
  finals = []
  for li, p in enumerate(params):
    H = p["w_hh"].shape[1]
    h0 = (jnp.zeros((B, H), jnp.float32) if initial_state is None
          else initial_state[li].astype(jnp.float32))
    w_ih, w_hh = p["w_ih"], p["w_hh"]
    b_ih, b_hh = p["b_ih"], p["b_hh"]

    def step(h, x_t):
      gx = x_t @ w_ih.T + b_ih
      gh = h @ w_hh.T + b_hh
      r = jax.nn.sigmoid(gx[:, :H] + gh[:, :H])
      z = jax.nn.sigmoid(gx[:, H:2 * H] + gh[:, H:2 * H])
      n = jnp.tanh(gx[:, 2 * H:] + r * gh[:, 2 * H:])
      h_new = (1.0 - z) * n + z * h
      return h_new, h_new

    h_last, y = lax.scan(step, h0, x)
    finals.append(h_last)
    x = y
  return jnp.transpose(x, (1, 0, 2)), jnp.stack(finals, axis=0)


def init_params(key, input_sizes, hidden_sizes):
  params = []
  for D, H in zip(input_sizes, hidden_sizes):
    key, k0, k1, k2, k3 = jax.random.split(key, 5)
    scale = 1.0 / np.sqrt(H)
    params.append({
        "w_ih": jax.random.uniform(k0, (3 * H, D), jnp.float32, -scale, scale),
        "w_hh": jax.random.uniform(k1, (3 * H, H), jnp.float32, -scale, scale),
        "b_ih": jax.random.uniform(k2, (3 * H,), jnp.float32, -scale, scale),
        "b_hh": jax.random.uniform(k3, (3 * H,), jnp.float32, -scale, scale),
    })
  return params


if __name__ == "__main__":
  # Small shapes: batch=2, seq=8, input=16, hidden=32, 2 stacked forward layers.
  B, T = 2, 8
  input_sizes = [16, 32]
  hidden_sizes = [32, 32]

  key = jax.random.PRNGKey(0)
  key, kx, kh = jax.random.split(key, 3)
  x = jax.random.normal(kx, (B, T, input_sizes[0]), jnp.float32)
  initial_state = jax.random.normal(kh, (len(hidden_sizes), B, hidden_sizes[0]),
                                    jnp.float32)
  params = init_params(key, input_sizes, hidden_sizes)

  ref_out, ref_final = _gru_reference(x, params, initial_state)

  # 1) float32 path: padded math is exact, must match the f32 reference tightly.
  out, final_h = stacked_gru_forward(x, params, initial_state,
                                     compute_dtype=jnp.float32, chunk=32)
  out, final_h = jax.block_until_ready((out, final_h))
  np.testing.assert_allclose(np.asarray(out), np.asarray(ref_out),
                             rtol=1e-5, atol=1e-5)
  np.testing.assert_allclose(np.asarray(final_h), np.asarray(ref_final),
                             rtol=1e-5, atol=1e-5)

  # 2) bfloat16 path (bf16 gx streaming + bf16 MXU operands, f32 state/accum):
  #    smoke-test against the f32 reference with a loose tolerance.
  out_bf, final_bf = stacked_gru_forward(x, params, initial_state,
                                         compute_dtype=jnp.bfloat16, chunk=32)
  out_bf, final_bf = jax.block_until_ready((out_bf, final_bf))
  np.testing.assert_allclose(np.asarray(out_bf), np.asarray(ref_out),
                             rtol=1e-1, atol=1e-1)
  np.testing.assert_allclose(np.asarray(final_bf), np.asarray(ref_final),
                             rtol=1e-1, atol=1e-1)

  # TODO(synk): PackedSequence handling, bidirectional and 'alternating' stack
  # modes are host-side glue in the PyTorch module and are not reproduced here.
  print("KERNEL_OK")
</pallas_src>

<mosaic_0001>
module attributes {stable_mosaic.version = 11 : i64} {
  func.func @_gru_recurrent_kernel(%arg0: i32, %arg1: i32, %arg2: memref<8x8x384xf32, #tpu.memory_space<vmem>>, %arg3: memref<8x128xf32, #tpu.memory_space<vmem>>, %arg4: memref<128x384xf32, #tpu.memory_space<vmem>>, %arg5: memref<1x384xf32, #tpu.memory_space<vmem>>, %arg6: memref<1x128xf32, #tpu.memory_space<vmem>>, %arg7: memref<8x8x128xf32, #tpu.memory_space<vmem>>, %arg8: memref<8x128xf32, #tpu.memory_space<vmem>>, %arg9: memref<8x128xf32, #tpu.memory_space<vmem>>) attributes {dimension_semantics = [#tpu.dimension_semantics<parallel>, #tpu.dimension_semantics<arbitrary>], iteration_bounds = array<i64: 1, 1>, scalar_prefetch = 0 : i64, scratch_operands = 1 : i64, tpu.core_type = #tpu.core_type<tc>, window_params = [{transform_indices = @transform_0, window_bounds = array<i64: 8, 8, 384>}, {transform_indices = @transform_1, window_bounds = array<i64: 8, 128>}, {pipeline_mode = #tpu.pipeline_mode<synchronous>, transform_indices = @transform_2, window_bounds = array<i64: 128, 384>}, {pipeline_mode = #tpu.pipeline_mode<synchronous>, transform_indices = @transform_3, window_bounds = array<i64: 1, 384>}, {pipeline_mode = #tpu.pipeline_mode<synchronous>, transform_indices = @transform_4, window_bounds = array<i64: 1, 128>}, {transform_indices = @transform_5, window_bounds = array<i64: 8, 8, 128>}, {transform_indices = @transform_6, window_bounds = array<i64: 8, 128>}]} {
    %c0_i32 = arith.constant 0 : i32
    %0 = arith.cmpi eq, %arg1, %c0_i32 : i32
    %1 = arith.extui %0 : i1 to i32
    %c0_i32_0 = arith.constant 0 : i32
    %2 = arith.cmpi ne, %1, %c0_i32_0 : i32
    scf.if %2 {
      %c0_68 = arith.constant 0 : index
      %c0_69 = arith.constant 0 : index
      %287 = vector.load %arg3[%c0_68, %c0_69] : memref<8x128xf32, #tpu.memory_space<vmem>>, vector<8x128xf32>
      %c0_70 = arith.constant 0 : index
      %c0_71 = arith.constant 0 : index
      %288 = vector.load %arg9[%c0_70, %c0_71] : memref<8x128xf32, #tpu.memory_space<vmem>>, vector<8x128xf32>
      tpu.vector_store %arg9[%c0_70, %c0_71], %287 {strides = array<i32>} : memref<8x128xf32, #tpu.memory_space<vmem>>, vector<8x128xf32>,
    } else {
    }
    %c0 = arith.constant 0 : index
    %c0_1 = arith.constant 0 : index
    %3 = vector.load %arg4[%c0, %c0_1] : memref<128x384xf32, #tpu.memory_space<vmem>>, vector<128x384xf32>
    %c0_2 = arith.constant 0 : index
    %c0_3 = arith.constant 0 : index
    %4 = vector.load %arg5[%c0_2, %c0_3] : memref<1x384xf32, #tpu.memory_space<vmem>>, vector<1x384xf32>
    %5 = vector.shape_cast %4 : vector<1x384xf32> to vector<1x384xf32>
    %6 = vector.broadcast %5 : vector<1x384xf32> to vector<8x384xf32>
    %c0_4 = arith.constant 0 : index
    %c0_5 = arith.constant 0 : index
    %7 = vector.load %arg6[%c0_4, %c0_5] : memref<1x128xf32, #tpu.memory_space<vmem>>, vector<1x128xf32>
    %8 = vector.shape_cast %7 : vector<1x128xf32> to vector<1x128xf32>
    %9 = vector.broadcast %8 : vector<1x128xf32> to vector<8x128xf32>
    %c0_6 = arith.constant 0 : index
    %c0_7 = arith.constant 0 : index
    %10 = vector.load %arg9[%c0_6, %c0_7] : memref<8x128xf32, #tpu.memory_space<vmem>>, vector<8x128xf32>
    %c0_i32_8 = arith.constant 0 : i32
    %11 = arith.index_cast %c0_i32_8 : i32 to index
    %c0_9 = arith.constant 0 : index
    %c0_10 = arith.constant 0 : index
    %12 = vector.load %arg2[%11, %c0_9, %c0_10] : memref<8x8x384xf32, #tpu.memory_space<vmem>>, vector<1x8x384xf32>
    %13 = vector.shape_cast %12 : vector<1x8x384xf32> to vector<8x384xf32>
    %14 = arith.addf %13, %6 : vector<8x384xf32>
    %cst = arith.constant dense<0.000000e+00> : vector<8x384xf32>
    %15 = tpu.matmul %10, %3, %cst {dimension_numbers = #tpu.dot_dimension_numbers<[1], [0], [0], [1], [0, 0, 1, 1], [], []>} : vector<8x128xf32>, vector<128x384xf32>, vector<8x384xf32> -> vector<8x384xf32>
    %16 = vector.extract_strided_slice %14 {offsets = [0, 0], sizes = [8, 128], strides = [1, 1]} : vector<8x384xf32> to vector<8x128xf32>
    %17 = vector.extract_strided_slice %15 {offsets = [0, 0], sizes = [8, 128], strides = [1, 1]} : vector<8x384xf32> to vector<8x128xf32>
    %18 = arith.addf %16, %17 : vector<8x128xf32>
    %19 = arith.negf %18 : vector<8x128xf32>
    %20 = math.exp %19 : vector<8x128xf32>
    %cst_11 = arith.constant 1.000000e+00 : f32
    %21 = vector.broadcast %cst_11 : f32 to vector<8x128xf32>
    %22 = arith.addf %21, %20 : vector<8x128xf32>
    %23 = arith.divf %21, %22 : vector<8x128xf32>
    %24 = vector.extract_strided_slice %14 {offsets = [0, 128], sizes = [8, 128], strides = [1, 1]} : vector<8x384xf32> to vector<8x128xf32>
    %25 = vector.extract_strided_slice %15 {offsets = [0, 128], sizes = [8, 128], strides = [1, 1]} : vector<8x384xf32> to vector<8x128xf32>
    %26 = arith.addf %24, %25 : vector<8x128xf32>
    %27 = arith.negf %26 : vector<8x128xf32>
    %28 = math.exp %27 : vector<8x128xf32>
    %cst_12 = arith.constant 1.000000e+00 : f32
    %29 = vector.broadcast %cst_12 : f32 to vector<8x128xf32>
    %30 = arith.addf %29, %28 : vector<8x128xf32>
    %31 = arith.divf %29, %30 : vector<8x128xf32>
    %32 = vector.extract_strided_slice %14 {offsets = [0, 256], sizes = [8, 128], strides = [1, 1]} : vector<8x384xf32> to vector<8x128xf32>
    %33 = vector.extract_strided_slice %15 {offsets = [0, 256], sizes = [8, 128], strides = [1, 1]} : vector<8x384xf32> to vector<8x128xf32>
    %34 = arith.addf %33, %9 : vector<8x128xf32>
    %35 = arith.mulf %23, %34 : vector<8x128xf32>
    %36 = arith.addf %32, %35 : vector<8x128xf32>
    %37 = math.tanh %36 : vector<8x128xf32>
    %38 = arith.subf %10, %37 : vector<8x128xf32>
    %39 = arith.mulf %31, %38 : vector<8x128xf32>
    %40 = arith.addf %37, %39 : vector<8x128xf32>
    %41 = arith.index_cast %c0_i32_8 : i32 to index
    %c0_13 = arith.constant 0 : index
    %c0_14 = arith.constant 0 : index
    %42 = vector.load %arg7[%41, %c0_13, %c0_14] : memref<8x8x128xf32, #tpu.memory_space<vmem>>, vector<1x8x128xf32>
    %43 = vector.shape_cast %42 : vector<1x8x128xf32> to vector<8x128xf32>
    %44 = vector.shape_cast %40 : vector<8x128xf32> to vector<1x8x128xf32>
    tpu.vector_store %arg7[%41, %c0_13, %c0_14], %44 {strides = array<i32>} : memref<8x8x128xf32, #tpu.memory_space<vmem>>, vector<1x8x128xf32>,
    %c1_i32 = arith.constant 1 : i32
    %45 = arith.index_cast %c1_i32 : i32 to index
    %c0_15 = arith.constant 0 : index
    %c0_16 = arith.constant 0 : index
    %46 = vector.load %arg2[%45, %c0_15, %c0_16] : memref<8x8x384xf32, #tpu.memory_space<vmem>>, vector<1x8x384xf32>
    %47 = vector.shape_cast %46 : vector<1x8x384xf32> to vector<8x384xf32>
    %48 = arith.addf %47, %6 : vector<8x384xf32>
    %cst_17 = arith.constant dense<0.000000e+00> : vector<8x384xf32>
    %49 = tpu.matmul %40, %3, %cst_17 {dimension_numbers = #tpu.dot_dimension_numbers<[1], [0], [0], [1], [0, 0, 1, 1], [], []>} : vector<8x128xf32>, vector<128x384xf32>, vector<8x384xf32> -> vector<8x384xf32>
    %50 = vector.extract_strided_slice %48 {offsets = [0, 0], sizes = [8, 128], strides = [1, 1]} : vector<8x384xf32> to vector<8x128xf32>
    %51 = vector.extract_strided_slice %49 {offsets = [0, 0], sizes = [8, 128], strides = [1, 1]} : vector<8x384xf32> to vector<8x128xf32>
    %52 = arith.addf %50, %51 : vector<8x128xf32>
    %53 = arith.negf %52 : vector<8x128xf32>
    %54 = math.exp %53 : vector<8x128xf32>
    %cst_18 = arith.constant 1.000000e+00 : f32
    %55 = vector.broadcast %cst_18 : f32 to vector<8x128xf32>
    %56 = arith.addf %55, %54 : vector<8x128xf32>
    %57 = arith.divf %55, %56 : vector<8x128xf32>
    %58 = vector.extract_strided_slice %48 {offsets = [0, 128], sizes = [8, 128], strides = [1, 1]} : vector<8x384xf32> to vector<8x128xf32>
    %59 = vector.extract_strided_slice %49 {offsets = [0, 128], sizes = [8, 128], strides = [1, 1]} : vector<8x384xf32> to vector<8x128xf32>
    %60 = arith.addf %58, %59 : vector<8x128xf32>
    %61 = arith.negf %60 : vector<8x128xf32>
    %62 = math.exp %61 : vector<8x128xf32>
    %cst_19 = arith.constant 1.000000e+00 : f32
    %63 = vector.broadcast %cst_19 : f32 to vector<8x128xf32>
    %64 = arith.addf %63, %62 : vector<8x128xf32>
    %65 = arith.divf %63, %64 : vector<8x128xf32>
    %66 = vector.extract_strided_slice %48 {offsets = [0, 256], sizes = [8, 128], strides = [1, 1]} : vector<8x384xf32> to vector<8x128xf32>
    %67 = vector.extract_strided_slice %49 {offsets = [0, 256], sizes = [8, 128], strides = [1, 1]} : vector<8x384xf32> to vector<8x128xf32>
    %68 = arith.addf %67, %9 : vector<8x128xf32>
    %69 = arith.mulf %57, %68 : vector<8x128xf32>
    %70 = arith.addf %66, %69 : vector<8x128xf32>
    %71 = math.tanh %70 : vector<8x128xf32>
    %72 = arith.subf %40, %71 : vector<8x128xf32>
    %73 = arith.mulf %65, %72 : vector<8x128xf32>
    %74 = arith.addf %71, %73 : vector<8x128xf32>
    %75 = arith.index_cast %c1_i32 : i32 to index
    %c0_20 = arith.constant 0 : index
    %c0_21 = arith.constant 0 : index
    %76 = vector.load %arg7[%75, %c0_20, %c0_21] : memref<8x8x128xf32, #tpu.memory_space<vmem>>, vector<1x8x128xf32>
    %77 = vector.shape_cast %76 : vector<1x8x128xf32> to vector<8x128xf32>
    %78 = vector.shape_cast %74 : vector<8x128xf32> to vector<1x8x128xf32>
    tpu.vector_store %arg7[%75, %c0_20, %c0_21], %78 {strides = array<i32>} : memref<8x8x128xf32, #tpu.memory_space<vmem>>, vector<1x8x128xf32>,
    %c2_i32 = arith.constant 2 : i32
    %79 = arith.index_cast %c2_i32 : i32 to index
    %c0_22 = arith.constant 0 : index
    %c0_23 = arith.constant 0 : index
    %80 = vector.load %arg2[%79, %c0_22, %c0_23] : memref<8x8x384xf32, #tpu.memory_space<vmem>>, vector<1x8x384xf32>
    %81 = vector.shape_cast %80 : vector<1x8x384xf32> to vector<8x384xf32>
    %82 = arith.addf %81, %6 : vector<8x384xf32>
    %cst_24 = arith.constant dense<0.000000e+00> : vector<8x384xf32>
    %83 = tpu.matmul %74, %3, %cst_24 {dimension_numbers = #tpu.dot_dimension_numbers<[1], [0], [0], [1], [0, 0, 1, 1], [], []>} : vector<8x128xf32>, vector<128x384xf32>, vector<8x384xf32> -> vector<8x384xf32>
    %84 = vector.extract_strided_slice %82 {offsets = [0, 0], sizes = [8, 128], strides = [1, 1]} : vector<8x384xf32> to vector<8x128xf32>
    %85 = vector.extract_strided_slice %83 {offsets = [0, 0], sizes = [8, 128], strides = [1, 1]} : vector<8x384xf32> to vector<8x128xf32>
    %86 = arith.addf %84, %85 : vector<8x128xf32>
    %87 = arith.negf %86 : vector<8x128xf32>
    %88 = math.exp %87 : vector<8x128xf32>
    %cst_25 = arith.constant 1.000000e+00 : f32
    %89 = vector.broadcast %cst_25 : f32 to vector<8x128xf32>
    %90 = arith.addf %89, %88 : vector<8x128xf32>
    %91 = arith.divf %89, %90 : vector<8x128xf32>
    %92 = vector.extract_strided_slice %82 {offsets = [0, 128], sizes = [8, 128], strides = [1, 1]} : vector<8x384xf32> to vector<8x128xf32>
    %93 = vector.extract_strided_slice %83 {offsets = [0, 128], sizes = [8, 128], strides = [1, 1]} : vector<8x384xf32> to vector<8x128xf32>
    %94 = arith.addf %92, %93 : vector<8x128xf32>
    %95 = arith.negf %94 : vector<8x128xf32>
    %96 = math.exp %95 : vector<8x128xf32>
    %cst_26 = arith.constant 1.000000e+00 : f32
    %97 = vector.broadcast %cst_26 : f32 to vector<8x128xf32>
    %98 = arith.addf %97, %96 : vector<8x128xf32>
    %99 = arith.divf %97, %98 : vector<8x128xf32>
    %100 = vector.extract_strided_slice %82 {offsets = [0, 256], sizes = [8, 128], strides = [1, 1]} : vector<8x384xf32> to vector<8x128xf32>
    %101 = vector.extract_strided_slice %83 {offsets = [0, 256], sizes = [8, 128], strides = [1, 1]} : vector<8x384xf32> to vector<8x128xf32>
    %102 = arith.addf %101, %9 : vector<8x128xf32>
    %103 = arith.mulf %91, %102 : vector<8x128xf32>
    %104 = arith.addf %100, %103 : vector<8x128xf32>
    %105 = math.tanh %104 : vector<8x128xf32>
    %106 = arith.subf %74, %105 : vector<8x128xf32>
    %107 = arith.mulf %99, %106 : vector<8x128xf32>
    %108 = arith.addf %105, %107 : vector<8x128xf32>
    %109 = arith.index_cast %c2_i32 : i32 to index
    %c0_27 = arith.constant 0 : index
    %c0_28 = arith.constant 0 : index
    %110 = vector.load %arg7[%109, %c0_27, %c0_28] : memref<8x8x128xf32, #tpu.memory_space<vmem>>, vector<1x8x128xf32>
    %111 = vector.shape_cast %110 : vector<1x8x128xf32> to vector<8x128xf32>
    %112 = vector.shape_cast %108 : vector<8x128xf32> to vector<1x8x128xf32>
    tpu.vector_store %arg7[%109, %c0_27, %c0_28], %112 {strides = array<i32>} : memref<8x8x128xf32, #tpu.memory_space<vmem>>, vector<1x8x128xf32>,
    %c3_i32 = arith.constant 3 : i32
    %113 = arith.index_cast %c3_i32 : i32 to index
    %c0_29 = arith.constant 0 : index
    %c0_30 = arith.constant 0 : index
    %114 = vector.load %arg2[%113, %c0_29, %c0_30] : memref<8x8x384xf32, #tpu.memory_space<vmem>>, vector<1x8x384xf32>
    %115 = vector.shape_cast %114 : vector<1x8x384xf32> to vector<8x384xf32>
    %116 = arith.addf %115, %6 : vector<8x384xf32>
    %cst_31 = arith.constant dense<0.000000e+00> : vector<8x384xf32>
    %117 = tpu.matmul %108, %3, %cst_31 {dimension_numbers = #tpu.dot_dimension_numbers<[1], [0], [0], [1], [0, 0, 1, 1], [], []>} : vector<8x128xf32>, vector<128x384xf32>, vector<8x384xf32> -> vector<8x384xf32>
    %118 = vector.extract_strided_slice %116 {offsets = [0, 0], sizes = [8, 128], strides = [1, 1]} : vector<8x384xf32> to vector<8x128xf32>
    %119 = vector.extract_strided_slice %117 {offsets = [0, 0], sizes = [8, 128], strides = [1, 1]} : vector<8x384xf32> to vector<8x128xf32>
    %120 = arith.addf %118, %119 : vector<8x128xf32>
    %121 = arith.negf %120 : vector<8x128xf32>
    %122 = math.exp %121 : vector<8x128xf32>
    %cst_32 = arith.constant 1.000000e+00 : f32
    %123 = vector.broadcast %cst_32 : f32 to vector<8x128xf32>
    %124 = arith.addf %123, %122 : vector<8x128xf32>
    %125 = arith.divf %123, %124 : vector<8x128xf32>
    %126 = vector.extract_strided_slice %116 {offsets = [0, 128], sizes = [8, 128], strides = [1, 1]} : vector<8x384xf32> to vector<8x128xf32>
    %127 = vector.extract_strided_slice %117 {offsets = [0, 128], sizes = [8, 128], strides = [1, 1]} : vector<8x384xf32> to vector<8x128xf32>
    %128 = arith.addf %126, %127 : vector<8x128xf32>
    %129 = arith.negf %128 : vector<8x128xf32>
    %130 = math.exp %129 : vector<8x128xf32>
    %cst_33 = arith.constant 1.000000e+00 : f32
    %131 = vector.broadcast %cst_33 : f32 to vector<8x128xf32>
    %132 = arith.addf %131, %130 : vector<8x128xf32>
    %133 = arith.divf %131, %132 : vector<8x128xf32>
    %134 = vector.extract_strided_slice %116 {offsets = [0, 256], sizes = [8, 128], strides = [1, 1]} : vector<8x384xf32> to vector<8x128xf32>
    %135 = vector.extract_strided_slice %117 {offsets = [0, 256], sizes = [8, 128], strides = [1, 1]} : vector<8x384xf32> to vector<8x128xf32>
    %136 = arith.addf %135, %9 : vector<8x128xf32>
    %137 = arith.mulf %125, %136 : vector<8x128xf32>
    %138 = arith.addf %134, %137 : vector<8x128xf32>
    %139 = math.tanh %138 : vector<8x128xf32>
    %140 = arith.subf %108, %139 : vector<8x128xf32>
    %141 = arith.mulf %133, %140 : vector<8x128xf32>
    %142 = arith.addf %139, %141 : vector<8x128xf32>
    %143 = arith.index_cast %c3_i32 : i32 to index
    %c0_34 = arith.constant 0 : index
    %c0_35 = arith.constant 0 : index
    %144 = vector.load %arg7[%143, %c0_34, %c0_35] : memref<8x8x128xf32, #tpu.memory_space<vmem>>, vector<1x8x128xf32>
    %145 = vector.shape_cast %144 : vector<1x8x128xf32> to vector<8x128xf32>
    %146 = vector.shape_cast %142 : vector<8x128xf32> to vector<1x8x128xf32>
    tpu.vector_store %arg7[%143, %c0_34, %c0_35], %146 {strides = array<i32>} : memref<8x8x128xf32, #tpu.memory_space<vmem>>, vector<1x8x128xf32>,
    %c4_i32 = arith.constant 4 : i32
    %147 = arith.index_cast %c4_i32 : i32 to index
    %c0_36 = arith.constant 0 : index
    %c0_37 = arith.constant 0 : index
    %148 = vector.load %arg2[%147, %c0_36, %c0_37] : memref<8x8x384xf32, #tpu.memory_space<vmem>>, vector<1x8x384xf32>
    %149 = vector.shape_cast %148 : vector<1x8x384xf32> to vector<8x384xf32>
    %150 = arith.addf %149, %6 : vector<8x384xf32>
    %cst_38 = arith.constant dense<0.000000e+00> : vector<8x384xf32>
    %151 = tpu.matmul %142, %3, %cst_38 {dimension_numbers = #tpu.dot_dimension_numbers<[1], [0], [0], [1], [0, 0, 1, 1], [], []>} : vector<8x128xf32>, vector<128x384xf32>, vector<8x384xf32> -> vector<8x384xf32>
    %152 = vector.extract_strided_slice %150 {offsets = [0, 0], sizes = [8, 128], strides = [1, 1]} : vector<8x384xf32> to vector<8x128xf32>
    %153 = vector.extract_strided_slice %151 {offsets = [0, 0], sizes = [8, 128], strides = [1, 1]} : vector<8x384xf32> to vector<8x128xf32>
    %154 = arith.addf %152, %153 : vector<8x128xf32>
    %155 = arith.negf %154 : vector<8x128xf32>
    %156 = math.exp %155 : vector<8x128xf32>
    %cst_39 = arith.constant 1.000000e+00 : f32
    %157 = vector.broadcast %cst_39 : f32 to vector<8x128xf32>
    %158 = arith.addf %157, %156 : vector<8x128xf32>
    %159 = arith.divf %157, %158 : vector<8x128xf32>
    %160 = vector.extract_strided_slice %150 {offsets = [0, 128], sizes = [8, 128], strides = [1, 1]} : vector<8x384xf32> to vector<8x128xf32>
    %161 = vector.extract_strided_slice %151 {offsets = [0, 128], sizes = [8, 128], strides = [1, 1]} : vector<8x384xf32> to vector<8x128xf32>
    %162 = arith.addf %160, %161 : vector<8x128xf32>
    %163 = arith.negf %162 : vector<8x128xf32>
    %164 = math.exp %163 : vector<8x128xf32>
    %cst_40 = arith.constant 1.000000e+00 : f32
    %165 = vector.broadcast %cst_40 : f32 to vector<8x128xf32>
    %166 = arith.addf %165, %164 : vector<8x128xf32>
    %167 = arith.divf %165, %166 : vector<8x128xf32>
    %168 = vector.extract_strided_slice %150 {offsets = [0, 256], sizes = [8, 128], strides = [1, 1]} : vector<8x384xf32> to vector<8x128xf32>
    %169 = vector.extract_strided_slice %151 {offsets = [0, 256], sizes = [8, 128], strides = [1, 1]} : vector<8x384xf32> to vector<8x128xf32>
    %170 = arith.addf %169, %9 : vector<8x128xf32>
    %171 = arith.mulf %159, %170 : vector<8x128xf32>
    %172 = arith.addf %168, %171 : vector<8x128xf32>
    %173 = math.tanh %172 : vector<8x128xf32>
    %174 = arith.subf %142, %173 : vector<8x128xf32>
    %175 = arith.mulf %167, %174 : vector<8x128xf32>
    %176 = arith.addf %173, %175 : vector<8x128xf32>
    %177 = arith.index_cast %c4_i32 : i32 to index
    %c0_41 = arith.constant 0 : index
    %c0_42 = arith.constant 0 : index
    %178 = vector.load %arg7[%177, %c0_41, %c0_42] : memref<8x8x128xf32, #tpu.memory_space<vmem>>, vector<1x8x128xf32>
    %179 = vector.shape_cast %178 : vector<1x8x128xf32> to vector<8x128xf32>
    %180 = vector.shape_cast %176 : vector<8x128xf32> to vector<1x8x128xf32>
    tpu.vector_store %arg7[%177, %c0_41, %c0_42], %180 {strides = array<i32>} : memref<8x8x128xf32, #tpu.memory_space<vmem>>, vector<1x8x128xf32>,
    %c5_i32 = arith.constant 5 : i32
    %181 = arith.index_cast %c5_i32 : i32 to index
    %c0_43 = arith.constant 0 : index
    %c0_44 = arith.constant 0 : index
    %182 = vector.load %arg2[%181, %c0_43, %c0_44] : memref<8x8x384xf32, #tpu.memory_space<vmem>>, vector<1x8x384xf32>
    %183 = vector.shape_cast %182 : vector<1x8x384xf32> to vector<8x384xf32>
    %184 = arith.addf %183, %6 : vector<8x384xf32>
    %cst_45 = arith.constant dense<0.000000e+00> : vector<8x384xf32>
    %185 = tpu.matmul %176, %3, %cst_45 {dimension_numbers = #tpu.dot_dimension_numbers<[1], [0], [0], [1], [0, 0, 1, 1], [], []>} : vector<8x128xf32>, vector<128x384xf32>, vector<8x384xf32> -> vector<8x384xf32>
    %186 = vector.extract_strided_slice %184 {offsets = [0, 0], sizes = [8, 128], strides = [1, 1]} : vector<8x384xf32> to vector<8x128xf32>
    %187 = vector.extract_strided_slice %185 {offsets = [0, 0], sizes = [8, 128], strides = [1, 1]} : vector<8x384xf32> to vector<8x128xf32>
    %188 = arith.addf %186, %187 : vector<8x128xf32>
    %189 = arith.negf %188 : vector<8x128xf32>
    %190 = math.exp %189 : vector<8x128xf32>
    %cst_46 = arith.constant 1.000000e+00 : f32
    %191 = vector.broadcast %cst_46 : f32 to vector<8x128xf32>
    %192 = arith.addf %191, %190 : vector<8x128xf32>
    %193 = arith.divf %191, %192 : vector<8x128xf32>
    %194 = vector.extract_strided_slice %184 {offsets = [0, 128], sizes = [8, 128], strides = [1, 1]} : vector<8x384xf32> to vector<8x128xf32>
    %195 = vector.extract_strided_slice %185 {offsets = [0, 128], sizes = [8, 128], strides = [1, 1]} : vector<8x384xf32> to vector<8x128xf32>
    %196 = arith.addf %194, %195 : vector<8x128xf32>
    %197 = arith.negf %196 : vector<8x128xf32>
    %198 = math.exp %197 : vector<8x128xf32>
    %cst_47 = arith.constant 1.000000e+00 : f32
    %199 = vector.broadcast %cst_47 : f32 to vector<8x128xf32>
    %200 = arith.addf %199, %198 : vector<8x128xf32>
    %201 = arith.divf %199, %200 : vector<8x128xf32>
    %202 = vector.extract_strided_slice %184 {offsets = [0, 256], sizes = [8, 128], strides = [1, 1]} : vector<8x384xf32> to vector<8x128xf32>
    %203 = vector.extract_strided_slice %185 {offsets = [0, 256], sizes = [8, 128], strides = [1, 1]} : vector<8x384xf32> to vector<8x128xf32>
    %204 = arith.addf %203, %9 : vector<8x128xf32>
    %205 = arith.mulf %193, %204 : vector<8x128xf32>
    %206 = arith.addf %202, %205 : vector<8x128xf32>
    %207 = math.tanh %206 : vector<8x128xf32>
    %208 = arith.subf %176, %207 : vector<8x128xf32>
    %209 = arith.mulf %201, %208 : vector<8x128xf32>
    %210 = arith.addf %207, %209 : vector<8x128xf32>
    %211 = arith.index_cast %c5_i32 : i32 to index
    %c0_48 = arith.constant 0 : index
    %c0_49 = arith.constant 0 : index
    %212 = vector.load %arg7[%211, %c0_48, %c0_49] : memref<8x8x128xf32, #tpu.memory_space<vmem>>, vector<1x8x128xf32>
    %213 = vector.shape_cast %212 : vector<1x8x128xf32> to vector<8x128xf32>
    %214 = vector.shape_cast %210 : vector<8x128xf32> to vector<1x8x128xf32>
    tpu.vector_store %arg7[%211, %c0_48, %c0_49], %214 {strides = array<i32>} : memref<8x8x128xf32, #tpu.memory_space<vmem>>, vector<1x8x128xf32>,
    %c6_i32 = arith.constant 6 : i32
    %215 = arith.index_cast %c6_i32 : i32 to index
    %c0_50 = arith.constant 0 : index
    %c0_51 = arith.constant 0 : index
    %216 = vector.load %arg2[%215, %c0_50, %c0_51] : memref<8x8x384xf32, #tpu.memory_space<vmem>>, vector<1x8x384xf32>
    %217 = vector.shape_cast %216 : vector<1x8x384xf32> to vector<8x384xf32>
    %218 = arith.addf %217, %6 : vector<8x384xf32>
    %cst_52 = arith.constant dense<0.000000e+00> : vector<8x384xf32>
    %219 = tpu.matmul %210, %3, %cst_52 {dimension_numbers = #tpu.dot_dimension_numbers<[1], [0], [0], [1], [0, 0, 1, 1], [], []>} : vector<8x128xf32>, vector<128x384xf32>, vector<8x384xf32> -> vector<8x384xf32>
    %220 = vector.extract_strided_slice %218 {offsets = [0, 0], sizes = [8, 128], strides = [1, 1]} : vector<8x384xf32> to vector<8x128xf32>
    %221 = vector.extract_strided_slice %219 {offsets = [0, 0], sizes = [8, 128], strides = [1, 1]} : vector<8x384xf32> to vector<8x128xf32>
    %222 = arith.addf %220, %221 : vector<8x128xf32>
    %223 = arith.negf %222 : vector<8x128xf32>
    %224 = math.exp %223 : vector<8x128xf32>
    %cst_53 = arith.constant 1.000000e+00 : f32
    %225 = vector.broadcast %cst_53 : f32 to vector<8x128xf32>
    %226 = arith.addf %225, %224 : vector<8x128xf32>
    %227 = arith.divf %225, %226 : vector<8x128xf32>
    %228 = vector.extract_strided_slice %218 {offsets = [0, 128], sizes = [8, 128], strides = [1, 1]} : vector<8x384xf32> to vector<8x128xf32>
    %229 = vector.extract_strided_slice %219 {offsets = [0, 128], sizes = [8, 128], strides = [1, 1]} : vector<8x384xf32> to vector<8x128xf32>
    %230 = arith.addf %228, %229 : vector<8x128xf32>
    %231 = arith.negf %230 : vector<8x128xf32>
    %232 = math.exp %231 : vector<8x128xf32>
    %cst_54 = arith.constant 1.000000e+00 : f32
    %233 = vector.broadcast %cst_54 : f32 to vector<8x128xf32>
    %234 = arith.addf %233, %232 : vector<8x128xf32>
    %235 = arith.divf %233, %234 : vector<8x128xf32>
    %236 = vector.extract_strided_slice %218 {offsets = [0, 256], sizes = [8, 128], strides = [1, 1]} : vector<8x384xf32> to vector<8x128xf32>
    %237 = vector.extract_strided_slice %219 {offsets = [0, 256], sizes = [8, 128], strides = [1, 1]} : vector<8x384xf32> to vector<8x128xf32>
    %238 = arith.addf %237, %9 : vector<8x128xf32>
    %239 = arith.mulf %227, %238 : vector<8x128xf32>
    %240 = arith.addf %236, %239 : vector<8x128xf32>
    %241 = math.tanh %240 : vector<8x128xf32>
    %242 = arith.subf %210, %241 : vector<8x128xf32>
    %243 = arith.mulf %235, %242 : vector<8x128xf32>
    %244 = arith.addf %241, %243 : vector<8x128xf32>
    %245 = arith.index_cast %c6_i32 : i32 to index
    %c0_55 = arith.constant 0 : index
    %c0_56 = arith.constant 0 : index
    %246 = vector.load %arg7[%245, %c0_55, %c0_56] : memref<8x8x128xf32, #tpu.memory_space<vmem>>, vector<1x8x128xf32>
    %247 = vector.shape_cast %246 : vector<1x8x128xf32> to vector<8x128xf32>
    %248 = vector.shape_cast %244 : vector<8x128xf32> to vector<1x8x128xf32>
    tpu.vector_store %arg7[%245, %c0_55, %c0_56], %248 {strides = array<i32>} : memref<8x8x128xf32, #tpu.memory_space<vmem>>, vector<1x8x128xf32>,
    %c7_i32 = arith.constant 7 : i32
    %249 = arith.index_cast %c7_i32 : i32 to index
    %c0_57 = arith.constant 0 : index
    %c0_58 = arith.constant 0 : index
    %250 = vector.load %arg2[%249, %c0_57, %c0_58] : memref<8x8x384xf32, #tpu.memory_space<vmem>>, vector<1x8x384xf32>
    %251 = vector.shape_cast %250 : vector<1x8x384xf32> to vector<8x384xf32>
    %252 = arith.addf %251, %6 : vector<8x384xf32>
    %cst_59 = arith.constant dense<0.000000e+00> : vector<8x384xf32>
    %253 = tpu.matmul %244, %3, %cst_59 {dimension_numbers = #tpu.dot_dimension_numbers<[1], [0], [0], [1], [0, 0, 1, 1], [], []>} : vector<8x128xf32>, vector<128x384xf32>, vector<8x384xf32> -> vector<8x384xf32>
    %254 = vector.extract_strided_slice %252 {offsets = [0, 0], sizes = [8, 128], strides = [1, 1]} : vector<8x384xf32> to vector<8x128xf32>
    %255 = vector.extract_strided_slice %253 {offsets = [0, 0], sizes = [8, 128], strides = [1, 1]} : vector<8x384xf32> to vector<8x128xf32>
    %256 = arith.addf %254, %255 : vector<8x128xf32>
    %257 = arith.negf %256 : vector<8x128xf32>
    %258 = math.exp %257 : vector<8x128xf32>
    %cst_60 = arith.constant 1.000000e+00 : f32
    %259 = vector.broadcast %cst_60 : f32 to vector<8x128xf32>
    %260 = arith.addf %259, %258 : vector<8x128xf32>
    %261 = arith.divf %259, %260 : vector<8x128xf32>
    %262 = vector.extract_strided_slice %252 {offsets = [0, 128], sizes = [8, 128], strides = [1, 1]} : vector<8x384xf32> to vector<8x128xf32>
    %263 = vector.extract_strided_slice %253 {offsets = [0, 128], sizes = [8, 128], strides = [1, 1]} : vector<8x384xf32> to vector<8x128xf32>
    %264 = arith.addf %262, %263 : vector<8x128xf32>
    %265 = arith.negf %264 : vector<8x128xf32>
    %266 = math.exp %265 : vector<8x128xf32>
    %cst_61 = arith.constant 1.000000e+00 : f32
    %267 = vector.broadcast %cst_61 : f32 to vector<8x128xf32>
    %268 = arith.addf %267, %266 : vector<8x128xf32>
    %269 = arith.divf %267, %268 : vector<8x128xf32>
    %270 = vector.extract_strided_slice %252 {offsets = [0, 256], sizes = [8, 128], strides = [1, 1]} : vector<8x384xf32> to vector<8x128xf32>
    %271 = vector.extract_strided_slice %253 {offsets = [0, 256], sizes = [8, 128], strides = [1, 1]} : vector<8x384xf32> to vector<8x128xf32>
    %272 = arith.addf %271, %9 : vector<8x128xf32>
    %273 = arith.mulf %261, %272 : vector<8x128xf32>
    %274 = arith.addf %270, %273 : vector<8x128xf32>
    %275 = math.tanh %274 : vector<8x128xf32>
    %276 = arith.subf %244, %275 : vector<8x128xf32>
    %277 = arith.mulf %269, %276 : vector<8x128xf32>
    %278 = arith.addf %275, %277 : vector<8x128xf32>
    %279 = arith.index_cast %c7_i32 : i32 to index
    %c0_62 = arith.constant 0 : index
    %c0_63 = arith.constant 0 : index
    %280 = vector.load %arg7[%279, %c0_62, %c0_63] : memref<8x8x128xf32, #tpu.memory_space<vmem>>, vector<1x8x128xf32>
    %281 = vector.shape_cast %280 : vector<1x8x128xf32> to vector<8x128xf32>
    %282 = vector.shape_cast %278 : vector<8x128xf32> to vector<1x8x128xf32>
    tpu.vector_store %arg7[%279, %c0_62, %c0_63], %282 {strides = array<i32>} : memref<8x8x128xf32, #tpu.memory_space<vmem>>, vector<1x8x128xf32>,
    %c8_i32 = arith.constant 8 : i32
    %c0_64 = arith.constant 0 : index
    %c0_65 = arith.constant 0 : index
    %283 = vector.load %arg9[%c0_64, %c0_65] : memref<8x128xf32, #tpu.memory_space<vmem>>, vector<8x128xf32>
    tpu.vector_store %arg9[%c0_64, %c0_65], %278 {strides = array<i32>} : memref<8x128xf32, #tpu.memory_space<vmem>>, vector<8x128xf32>,
    %c0_i32_66 = arith.constant 0 : i32
    %284 = arith.cmpi eq, %arg1, %c0_i32_66 : i32
    %285 = arith.extui %284 : i1 to i32
    %c0_i32_67 = arith.constant 0 : i32
    %286 = arith.cmpi ne, %285, %c0_i32_67 : i32
    scf.if %286 {
      %c0_68 = arith.constant 0 : index
      %c0_69 = arith.constant 0 : index
      %287 = vector.load %arg8[%c0_68, %c0_69] : memref<8x128xf32, #tpu.memory_space<vmem>>, vector<8x128xf32>
      tpu.vector_store %arg8[%c0_68, %c0_69], %278 {strides = array<i32>} : memref<8x128xf32, #tpu.memory_space<vmem>>, vector<8x128xf32>,
    } else {
    }
    return
  }
  func.func @transform_0(%arg0: i32, %arg1: i32) -> (i32, i32, i32) {
    %c0_i32 = arith.constant 0 : i32
    %c0_i32_0 = arith.constant 0 : i32
    return %arg1, %arg0, %c0_i32 : i32, i32, i32
  }
  func.func @transform_1(%arg0: i32, %arg1: i32) -> (i32, i32) {
    %c0_i32 = arith.constant 0 : i32
    %c0_i32_0 = arith.constant 0 : i32
    return %arg0, %c0_i32 : i32, i32
  }
  func.func @transform_2(%arg0: i32, %arg1: i32) -> (i32, i32) {
    %c0_i32 = arith.constant 0 : i32
    %c0_i32_0 = arith.constant 0 : i32
    %c0_i32_1 = arith.constant 0 : i32
    return %c0_i32, %c0_i32_0 : i32, i32
  }
  func.func @transform_3(%arg0: i32, %arg1: i32) -> (i32, i32) {
    %c0_i32 = arith.constant 0 : i32
    %c0_i32_0 = arith.constant 0 : i32
    %c0_i32_1 = arith.constant 0 : i32
    return %c0_i32, %c0_i32_0 : i32, i32
  }
  func.func @transform_4(%arg0: i32, %arg1: i32) -> (i32, i32) {
    %c0_i32 = arith.constant 0 : i32
    %c0_i32_0 = arith.constant 0 : i32
    %c0_i32_1 = arith.constant 0 : i32
    return %c0_i32, %c0_i32_0 : i32, i32
  }
  func.func @transform_5(%arg0: i32, %arg1: i32) -> (i32, i32, i32) {
    %c0_i32 = arith.constant 0 : i32
    %c0_i32_0 = arith.constant 0 : i32
    return %arg1, %arg0, %c0_i32 : i32, i32, i32
  }
  func.func @transform_6(%arg0: i32, %arg1: i32) -> (i32, i32) {
    %c0_i32 = arith.constant 0 : i32
    %c0_i32_0 = arith.constant 0 : i32
    return %arg0, %c0_i32 : i32, i32
  }
}

</mosaic_0001>

<bundles_post_ra>
// kernel: tpu_custom_call.1
= control target key start
LH: loop header
LB: loop body
LE: loop exit
PB: predicated region body
PF: predicated region fallthrough
CT: control target
= control target key end

     0   :  { %12 = vsyncpa [#allocation4], 0  ;;  %s2091_s0 = inlined_call_operand.hbm [shape: f32[8,8,384], index: 0, kind: input, shape index: {}]   ;;  %s2092_s1 = inlined_call_operand.hbm [shape: f32[8,128], index: 1, kind: input, shape index: {}]   ;;  %s2093_s2 = inlined_call_operand.hbm [shape: f32[128,384], index: 2, kind: input, shape index: {}]   ;;  %s2094_s3 = inlined_call_operand.hbm [shape: f32[1,384], index: 3, kind: input, shape index: {}]   ;;  %s2095_s4 = inlined_call_operand.vmem [shape: f32[1,128], index: 4, kind: input, shape index: {}]   ;;  %s2096_s5 = inlined_call_operand.hbm [shape: f32[8,8,128], index: 5, kind: output, shape index: {0}]   ;;  %s2097_s6 = inlined_call_operand.hbm [shape: f32[8,128], index: 6, kind: output, shape index: {1}]  }
   0x1   :  { %13 = vsyncpa [#allocation7], 0 }
   0x2   :  { %14 = vsyncpa [#allocation10], 0 }
   0x3   :  { %15 = vsyncpa [#allocation5], 0  ;;  %s35_s23 = sshll.u32 %s2092_s1, 4  ;;  %s36_s23 = int_to_ptr.hbm [resolvable:$true] %s35_s23 }
   0x4   :  { %16 = vsyncpa [#allocation13], 0  ;;  %s1428_s24 = smov [#allocation6]   ;;  %s21_s28 = sshll.u32 %s2091_s0, 4  ;;  %s22_s28 = int_to_ptr.hbm [resolvable:$true] %s21_s28 }
   0x5   :  { %s37_s25 = sshll.u32 %s1428_s24, 4  ;;  %s1429_s29 = smov [#allocation3]   ;;  %s38_s25 = int_to_ptr.vmem [resolvable:$true] %s37_s25 }
   0x6   :  { %40 = dma.hbm_to_vmem [thread:$0]  %s36_s23, 128, %s38_s25, [#allocation7]  }
   0x7   :  { %s23_s30 = sshll.u32 %s1429_s29, 4  ;;  %s1430_s7 = smov 384   ;;  %s24_s30 = int_to_ptr.vmem [resolvable:$true] %s23_s30 }
   0x8   :  { %s1431_s8 = smov 24   ;;  %s45_s1 = sshll.u32 %s2093_s2, 4  ;;  %s46_s1 = int_to_ptr.hbm [resolvable:$true] %s45_s1 }
   0x9   :  { %29 = dma.hbm_to_vmem [thread:$0]  %s22_s28, 3072, %s24_s30, [#allocation4], %s1430_s7, %s1430_s7, %s1431_s8  }
   0xa   :  { %s1432_s11 = smov [#allocation8]   ;;  %s59_s0 = sshll.u32 %s2094_s3, 4  ;;  %s60_s0 = int_to_ptr.hbm [resolvable:$true] %s59_s0 }
   0xb   :  { %s47_s12 = sshll.u32 %s1432_s11, 4  ;;  %s1433_s15 = smov [#allocation9]   ;;  %s48_s12 = int_to_ptr.vmem [resolvable:$true] %s47_s12 }
   0xc   :  { %53 = dma.hbm_to_vmem [thread:$0]  %s46_s1, 6144, %s48_s12, [#allocation7], %s1430_s7, %s1430_s7, %s1431_s8  }
   0xd   :  { %s61_s16 = sshll.u32 %s1433_s15, 4  ;;  %s62_s16 = int_to_ptr.vmem [resolvable:$true] %s61_s16 }
   0xe   :  { %64 = dma.hbm_to_vmem [thread:$0]  %s60_s0, 48, %s62_s16, [#allocation10]  }
   0xf   :  { %1418 = dma.done.wait [#allocation4], 3072  }
  0x10   :  { %1419 = vsyncadd [#allocation4], 4294964224 }
  0x11   :  { %1420 = dma.done.wait [#allocation7], 6272  }
  0x12   :  { %1421 = vsyncadd [#allocation7], 4294961024 }
  0x13   :  { %1422 = dma.done.wait [#allocation10], 48  }
  0x14   :  { %1423 = vsyncadd [#allocation10], 4294967248  ;;  %v1485_v0 = vld [vmem:[#allocation8 + $0x168] sm:$0xff]  ;;  %v1487_v1 = vld [vmem:[#allocation8 + $0x170] sm:$0xff]  ;;  %s1087_s22 = sshll.u32 %s2096_s5, 4  ;;  %s1435_s23 = smov [#allocation12]   ;;  %s1088_s22 = int_to_ptr.hbm [resolvable:$true] %s1087_s22 }
  0x15   :  { %v1489_v2 = vld [vmem:[#allocation8 + $0x150] sm:$0xff]  ;;  %156 = vmatpush.msra.mxu0 %v1485_v0  ;;  %176 = vmatpush.msra.mxu1 %v1487_v1  ;;  %v1493_v3 = vld [vmem:[#allocation8 + $0x158] sm:$0xff]  ;;  %v1497_v5 = vld [vmem:[#allocation8 + $0x140] sm:$0xff]  ;;  %s1099_s24 = sshll.u32 %s1435_s23, 4  ;;  %s1101_s27 = sshll.u32 %s2097_s6, 4  ;;  %s1100_s24 = int_to_ptr.vmem [resolvable:$true] %s1099_s24  ;;  %s1102_s27 = int_to_ptr.hbm [resolvable:$true] %s1101_s27 }
  0x16   :  { %v1495_v4 = vld [vmem:[#allocation8 + $0x138] sm:$0xff]  ;;  %271 = vmatpush.msra.mxu3 %v1485_v0  ;;  %v1502_v6 = vld [vmem:[#allocation8 + $0x120] sm:$0xff]  ;;  %v1504_v7 = vld [vmem:[#allocation8 + $0x128] sm:$0xff]  ;;  %s1436_s28 = smov 128   ;;  %s1437_s29 = smov 8  }
  0x17   :  { %157 = vmatpush.msra.mxu0 %v1489_v2  ;;  %177 = vmatpush.msra.mxu1 %v1493_v3  ;;  %v1509_v8 = vld [vmem:[#allocation8 + $0x108] sm:$0xff]  ;;  %v1511_v9 = vld [vmem:[#allocation8 + $0x110] sm:$0xff]  ;;  %v1518_v11 = vld [vmem:[#allocation8 + $0xf8] sm:$0xff] }
  0x18   :  { %272 = vmatpush.msra.mxu3 %v1489_v2  ;;  %v1516_v10 = vld [vmem:[#allocation8 + $0xf0] sm:$0xff]  ;;  %v1520_v12 = vld [vmem:[#allocation8 + $0x178] sm:$0xff]  ;;  %v1525_v13 = vld [vmem:[#allocation8 + $0x160] sm:$0xff] }
  0x19   :  { %158 = vmatpush.msra.mxu0 %v1495_v4  ;;  %178 = vmatpush.msra.mxu1 %v1497_v5  ;;  %v1527_v14 = vld [vmem:[#allocation8 + $0xd8] sm:$0xff]  ;;  %v1529_v15 = vld [vmem:[#allocation8 + $0xe0] sm:$0xff]  ;;  %v1535_v16 = vld [vmem:[#allocation8 + $0x148] sm:$0xff] }
  0x1a   :  { %273 = vmatpush.msra.mxu3 %v1495_v4  ;;  %196 = vmatpush.msra.mxu2 %v1520_v12  ;;  %v1537_v17 = vld [vmem:[#allocation8 + $0xc0] sm:$0xff]  ;;  %v1539_v18 = vld [vmem:[#allocation8 + $0xc8] sm:$0xff]  ;;  %v1545_v19 = vld [vmem:[#allocation8 + $0x130] sm:$0xff] }
  0x1b   :  { %159 = vmatpush.msra.mxu0 %v1502_v6  ;;  %179 = vmatpush.msra.mxu1 %v1504_v7  ;;  %v1547_v20 = vld [vmem:[#allocation8 + $0xa8] sm:$0xff]  ;;  %v1549_v21 = vld [vmem:[#allocation8 + $0xb0] sm:$0xff]  ;;  %v1555_v22 = vld [vmem:[#allocation8 + $0x118] sm:$0xff] }
  0x1c   :  { %274 = vmatpush.msra.mxu3 %v1502_v6  ;;  %197 = vmatpush.msra.mxu2 %v1525_v13  ;;  %v1557_v23 = vld [vmem:[#allocation8 + $0x90] sm:$0xff]  ;;  %v1559_v24 = vld [vmem:[#allocation8 + $0x98] sm:$0xff]  ;;  %v1565_v25 = vld [vmem:[#allocation8 + $0x100] sm:$0xff] }
  0x1d   :  { %160 = vmatpush.msra.mxu0 %v1509_v8  ;;  %180 = vmatpush.msra.mxu1 %v1511_v9  ;;  %v1567_v26 = vld [vmem:[#allocation8 + $0x78] sm:$0xff]  ;;  %v1569_v27 = vld [vmem:[#allocation8 + $0x80] sm:$0xff]  ;;  %v1575_v28 = vld [vmem:[#allocation8 + $0xe8] sm:$0xff] }
  0x1e   :  { %275 = vmatpush.msra.mxu3 %v1509_v8  ;;  %198 = vmatpush.msra.mxu2 %v1535_v16  ;;  %v1577_v29 = vld [vmem:[#allocation8 + $0x60] sm:$0xff]  ;;  %v1579_v30 = vld [vmem:[#allocation8 + $0x68] sm:$0xff]  ;;  %v1585_v31 = vld [vmem:[#allocation8 + $0xd0] sm:$0xff] }
  0x1f   :  { %161 = vmatpush.msra.mxu0 %v1516_v10  ;;  %181 = vmatpush.msra.mxu1 %v1518_v11  ;;  %v1587_v32 = vld [vmem:[#allocation8 + $0x48] sm:$0xff]  ;;  %v1589_v33 = vld [vmem:[#allocation8 + $0x50] sm:$0xff]  ;;  %v1595_v34 = vld [vmem:[#allocation8 + $0xb8] sm:$0xff] }
  0x20   :  { %276 = vmatpush.msra.mxu3 %v1516_v10  ;;  %199 = vmatpush.msra.mxu2 %v1545_v19  ;;  %v1597_v35 = vld [vmem:[#allocation8 + $0x30] sm:$0xff]  ;;  %v1599_v36 = vld [vmem:[#allocation8 + $0x38] sm:$0xff]  ;;  %v1605_v37 = vld [vmem:[#allocation8 + $0xa0] sm:$0xff] }
  0x21   :  { %162 = vmatpush.msra.mxu0 %v1527_v14  ;;  %182 = vmatpush.msra.mxu1 %v1529_v15  ;;  %2120 = vst [vmem:[#allocation19_spill] sm:$0xff] %v1597_v35  ;;  %v1607_v38 = vld [vmem:[#allocation8 + $0x18] sm:$0xff]  ;;  %v1609_v39 = vld [vmem:[#allocation8 + $0x20] sm:$0xff]  ;;  %v1615_v40 = vld [vmem:[#allocation8 + $0x88] sm:$0xff] }
  0x22   :  { %277 = vmatpush.msra.mxu3 %v1527_v14  ;;  %200 = vmatpush.msra.mxu2 %v1555_v22  ;;  %2121 = vst [vmem:[#allocation20_spill] sm:$0xff] %v1599_v36  ;;  %v1617_v41 = vld [vmem:[#allocation8] sm:$0xff]  ;;  %v1619_v42 = vld [vmem:[#allocation8 + $0x8] sm:$0xff]  ;;  %v1625_v43 = vld [vmem:[#allocation6] sm:$0xff] }
  0x23   :  { %163 = vmatpush.msra.mxu0 %v1537_v17  ;;  %183 = vmatpush.msra.mxu1 %v1539_v18  ;;  %2122 = vst [vmem:[#allocation21_spill] sm:$0xff] %v1607_v38  ;;  %v1628_v44 = vld [vmem:[#allocation8 + $0x70] sm:$0xff]  ;;  %v1635_v45 = vld [vmem:[#allocation8 + $0x58] sm:$0xff]  ;;  %v1639_v46 = vld [vmem:[#allocation8 + $0x40] sm:$0xff] }
  0x24   :  { %278 = vmatpush.msra.mxu3 %v1537_v17  ;;  %201 = vmatpush.msra.mxu2 %v1565_v25  ;;  %2123 = vst [vmem:[#allocation22_spill] sm:$0xff] %v1609_v39  ;;  %v1645_v47 = vld [vmem:[#allocation8 + $0x28] sm:$0xff]  ;;  %v1651_v48 = vld [vmem:[#allocation8 + $0x10] sm:$0xff]  ;;  %v137_v49 = vld [vmem:[#allocation9] sm:$0x7] }
  0x25   :  { %164 = vmatpush.msra.mxu0 %v1547_v20  ;;  %184 = vmatpush.msra.mxu1 %v1549_v21  ;;  %2124 = vst [vmem:[#allocation23_spill] sm:$0xff] %v1617_v41  ;;  %v1762_v50 = vperm.slane %v137_v49, 0  ;;  %v1764_v51 = vperm.slane %v137_v49, 1  ;;  %v150_v52 = vld [vmem:[#allocation3] sm:$0xff]  ;;  %v151_v53 = vld [vmem:[#allocation3 + $0x8] sm:$0xff] }
  0x26   :  { %279 = vmatpush.msra.mxu3 %v1547_v20  ;;  %202 = vmatpush.msra.mxu2 %v1575_v28  ;;  %2125 = vst [vmem:[#allocation24_spill] sm:$0xff] %v1619_v42 }
  0x27   :  { %165 = vmatpush.msra.mxu0 %v1557_v23  ;;  %185 = vmatpush.msra.mxu1 %v1559_v24  ;;  %2126 = vst [vmem:[#allocation25_spill] sm:$0xff] %v1639_v46  ;;  %v153_v54 = vadd.f32 %v150_v52, %v1762_v50  ;;  %v154_v55 = vadd.f32 %v151_v53, %v1764_v51  ;;  %v1771_v52 = vld [vmem:[%s2095_s4] ss:$0 sm:$0xff] }
  0x28   :  { %280 = vmatpush.msra.mxu3 %v1557_v23  ;;  %203 = vmatpush.msra.mxu2 %v1585_v31  ;;  %2127 = vst [vmem:[#allocation26_spill] sm:$0xff] %v1645_v47 }
  0x29   :  { %166 = vmatpush.msra.mxu0 %v1567_v26  ;;  %186 = vmatpush.msra.mxu1 %v1569_v27  ;;  %2128 = vst [vmem:[#allocation27_spill] sm:$0xff] %v1651_v48 }
  0x2a   :  { %281 = vmatpush.msra.mxu3 %v1567_v26  ;;  %204 = vmatpush.msra.mxu2 %v1595_v34  ;;  %2129 = vst [vmem:[#allocation28_spill] sm:$0xff] %v1762_v50 }
  0x2b   :  { %167 = vmatpush.msra.mxu0 %v1577_v29  ;;  %187 = vmatpush.msra.mxu1 %v1579_v30  ;;  %2130 = vst [vmem:[#allocation29_spill] sm:$0xff] %v1764_v51 }
  0x2c   :  { %282 = vmatpush.msra.mxu3 %v1577_v29  ;;  %205 = vmatpush.msra.mxu2 %v1605_v37 }
  0x2d   :  { %168 = vmatpush.msra.mxu0 %v1587_v32  ;;  %188 = vmatpush.msra.mxu1 %v1589_v33 }
  0x2e   :  { %283 = vmatpush.msra.mxu3 %v1587_v32  ;;  %206 = vmatpush.msra.mxu2 %v1615_v40 }
  0x2f   :  { %169 = vmatpush.msra.mxu0 %v1597_v35  ;;  %189 = vmatpush.msra.mxu1 %v1599_v36 }
  0x30   :  { %284 = vmatpush.msra.mxu3 %v1597_v35  ;;  %207 = vmatpush.msra.mxu2 %v1628_v44 }
  0x31   :  { %170 = vmatpush.msra.mxu0 %v1607_v38  ;;  %190 = vmatpush.msra.mxu1 %v1609_v39 }
  0x32   :  { %285 = vmatpush.msra.mxu3 %v1607_v38  ;;  %208 = vmatpush.msra.mxu2 %v1635_v45 }
  0x33   :  { %171 = vmatpush.msra.mxu0 %v1617_v41  ;;  %191 = vmatpush.msra.mxu1 %v1619_v42 }
  0x34   :  { %172 = vmatmul.f32.vlgmr.msra.gmra.mxu0 %v1625_v43  ;;  %192 = vmatmul.f32.vlgmr.msra.gmra.mxu1 %v1625_v43 }
  0x35   :  { %291 = vmatpush.msrb.mxu0 %v1487_v1  ;;  %311 = vmatpush.msrb.mxu1 %v1520_v12 }
  0x36   :  { %286 = vmatpush.msra.mxu3 %v1617_v41  ;;  %209 = vmatpush.msra.mxu2 %v1639_v46 }
  0x37   :  { %292 = vmatpush.msrb.mxu0 %v1493_v3  ;;  %312 = vmatpush.msrb.mxu1 %v1525_v13 }
  0x38   :  { %407 = vmatpush.msrb.mxu3 %v1487_v1  ;;  %210 = vmatpush.msra.mxu2 %v1645_v47 }
  0x39   :  { %293 = vmatpush.msrb.mxu0 %v1497_v5  ;;  %313 = vmatpush.msrb.mxu1 %v1535_v16 }
  0x3a   :  { %408 = vmatpush.msrb.mxu3 %v1493_v3  ;;  %211 = vmatpush.msra.mxu2 %v1651_v48 }
  0x3b   :  { %294 = vmatpush.msrb.mxu0 %v1504_v7  ;;  %314 = vmatpush.msrb.mxu1 %v1545_v19 }
  0x3c   :  { %409 = vmatpush.msrb.mxu3 %v1497_v5  ;;  %212 = vmatmul.f32.vlgmr.msra.gmra.mxu2 %v1625_v43 }
  0x3d   :  { %295 = vmatpush.msrb.mxu0 %v1511_v9  ;;  %315 = vmatpush.msrb.mxu1 %v1555_v22 }
  0x3e   :  { %387 = vmatpush.msrb.mxu2 %v1485_v0  ;;  %410 = vmatpush.msrb.mxu3 %v1504_v7 }
  0x3f   :  { %296 = vmatpush.msrb.mxu0 %v1518_v11  ;;  %316 = vmatpush.msrb.mxu1 %v1565_v25 }
  0x40   :  { %388 = vmatpush.msrb.mxu2 %v1489_v2  ;;  %411 = vmatpush.msrb.mxu3 %v1511_v9 }
  0x41   :  { %297 = vmatpush.msrb.mxu0 %v1529_v15  ;;  %317 = vmatpush.msrb.mxu1 %v1575_v28 }
  0x42   :  { %389 = vmatpush.msrb.mxu2 %v1495_v4  ;;  %412 = vmatpush.msrb.mxu3 %v1518_v11 }
  0x43   :  { %298 = vmatpush.msrb.mxu0 %v1539_v18  ;;  %318 = vmatpush.msrb.mxu1 %v1585_v31 }
  0x44   :  { %390 = vmatpush.msrb.mxu2 %v1502_v6  ;;  %413 = vmatpush.msrb.mxu3 %v1529_v15 }
  0x45   :  { %299 = vmatpush.msrb.mxu0 %v1549_v21  ;;  %319 = vmatpush.msrb.mxu1 %v1595_v34 }
  0x46   :  { %391 = vmatpush.msrb.mxu2 %v1509_v8  ;;  %414 = vmatpush.msrb.mxu3 %v1539_v18 }
  0x47   :  { %300 = vmatpush.msrb.mxu0 %v1559_v24  ;;  %320 = vmatpush.msrb.mxu1 %v1605_v37 }
  0x48   :  { %392 = vmatpush.msrb.mxu2 %v1516_v10  ;;  %415 = vmatpush.msrb.mxu3 %v1549_v21 }
  0x49   :  { %301 = vmatpush.msrb.mxu0 %v1569_v27  ;;  %321 = vmatpush.msrb.mxu1 %v1615_v40 }
  0x4a   :  { %393 = vmatpush.msrb.mxu2 %v1527_v14  ;;  %416 = vmatpush.msrb.mxu3 %v1559_v24 }
  0x4b   :  { %302 = vmatpush.msrb.mxu0 %v1579_v30  ;;  %322 = vmatpush.msrb.mxu1 %v1628_v44 }
  0x4c   :  { %394 = vmatpush.msrb.mxu2 %v1537_v17  ;;  %417 = vmatpush.msrb.mxu3 %v1569_v27 }
  0x4d   :  { %303 = vmatpush.msrb.mxu0 %v1589_v33  ;;  %323 = vmatpush.msrb.mxu1 %v1635_v45 }
  0x4e   :  { %395 = vmatpush.msrb.mxu2 %v1547_v20  ;;  %418 = vmatpush.msrb.mxu3 %v1579_v30 }
  0x4f   :  { %304 = vmatpush.msrb.mxu0 %v1599_v36  ;;  %324 = vmatpush.msrb.mxu1 %v1639_v46 }
  0x50   :  { %396 = vmatpush.msrb.mxu2 %v1557_v23  ;;  %419 = vmatpush.msrb.mxu3 %v1589_v33 }
  0x51   :  { %305 = vmatpush.msrb.mxu0 %v1609_v39  ;;  %325 = vmatpush.msrb.mxu1 %v1645_v47 }
  0x52   :  { %397 = vmatpush.msrb.mxu2 %v1567_v26  ;;  %420 = vmatpush.msrb.mxu3 %v1599_v36 }
  0x53   :  { %306 = vmatpush.msrb.mxu0 %v1619_v42  ;;  %326 = vmatpush.msrb.mxu1 %v1651_v48 }
  0x54   :  { %398 = vmatpush.msrb.mxu2 %v1577_v29  ;;  %421 = vmatpush.msrb.mxu3 %v1609_v39 }
  0x55   :  { %427 = vmatpush.msra.mxu0 %v1520_v12  ;;  %503 = vmatpush.msra.mxu1 %v1485_v0 }
  0x56   :  { %399 = vmatpush.msrb.mxu2 %v1587_v32  ;;  %422 = vmatpush.msrb.mxu3 %v1619_v42 }
  0x57   :  { %428 = vmatpush.msra.mxu0 %v1525_v13  ;;  %504 = vmatpush.msra.mxu1 %v1489_v2 }
  0x58   :  { %400 = vmatpush.msrb.mxu2 %v1597_v35 }
  0x59   :  { %429 = vmatpush.msra.mxu0 %v1535_v16  ;;  %505 = vmatpush.msra.mxu1 %v1495_v4 }
  0x5a   :  { %401 = vmatpush.msrb.mxu2 %v1607_v38 }
  0x5b   :  { %430 = vmatpush.msra.mxu0 %v1545_v19  ;;  %506 = vmatpush.msra.mxu1 %v1502_v6 }
  0x5c   :  { %402 = vmatpush.msrb.mxu2 %v1617_v41 }
  0x5d   :  { %431 = vmatpush.msra.mxu0 %v1555_v22  ;;  %507 = vmatpush.msra.mxu1 %v1509_v8 }
  0x5e   :  { %523 = vmatpush.msra.mxu2 %v1487_v1 }
  0x5f   :  { %432 = vmatpush.msra.mxu0 %v1565_v25  ;;  %508 = vmatpush.msra.mxu1 %v1516_v10 }
  0x60   :  { %524 = vmatpush.msra.mxu2 %v1493_v3 }
  0x61   :  { %433 = vmatpush.msra.mxu0 %v1575_v28  ;;  %509 = vmatpush.msra.mxu1 %v1527_v14 }
  0x62   :  { %525 = vmatpush.msra.mxu2 %v1497_v5 }
  0x63   :  { %434 = vmatpush.msra.mxu0 %v1585_v31  ;;  %510 = vmatpush.msra.mxu1 %v1537_v17 }
  0x64   :  { %526 = vmatpush.msra.mxu2 %v1504_v7 }
  0x65   :  { %435 = vmatpush.msra.mxu0 %v1595_v34  ;;  %511 = vmatpush.msra.mxu1 %v1547_v20 }
  0x66   :  { %527 = vmatpush.msra.mxu2 %v1511_v9 }
  0x67   :  { %436 = vmatpush.msra.mxu0 %v1605_v37  ;;  %512 = vmatpush.msra.mxu1 %v1557_v23 }
  0x68   :  { %528 = vmatpush.msra.mxu2 %v1518_v11 }
  0x69   :  { %437 = vmatpush.msra.mxu0 %v1615_v40  ;;  %513 = vmatpush.msra.mxu1 %v1567_v26 }
  0x6a   :  { %529 = vmatpush.msra.mxu2 %v1529_v15 }
  0x6b   :  { %438 = vmatpush.msra.mxu0 %v1628_v44  ;;  %514 = vmatpush.msra.mxu1 %v1577_v29 }
  0x6c   :  { %530 = vmatpush.msra.mxu2 %v1539_v18 }
  0x6d   :  { %439 = vmatpush.msra.mxu0 %v1635_v45  ;;  %515 = vmatpush.msra.mxu1 %v1587_v32 }
  0x6e   :  { %531 = vmatpush.msra.mxu2 %v1549_v21 }
  0x6f   :  { %440 = vmatpush.msra.mxu0 %v1639_v46  ;;  %516 = vmatpush.msra.mxu1 %v1597_v35 }
  0x70   :  { %532 = vmatpush.msra.mxu2 %v1559_v24 }
  0x71   :  { %441 = vmatpush.msra.mxu0 %v1645_v47  ;;  %517 = vmatpush.msra.mxu1 %v1607_v38 }
  0x72   :  { %533 = vmatpush.msra.mxu2 %v1569_v27 }
  0x73   :  { %442 = vmatpush.msra.mxu0 %v1651_v48  ;;  %518 = vmatpush.msra.mxu1 %v1617_v41 }
  0x74   :  { %534 = vmatpush.msra.mxu2 %v1579_v30 }
  0x76   :  { %535 = vmatpush.msra.mxu2 %v1589_v33 }
  0x78   :  { %536 = vmatpush.msra.mxu2 %v1599_v36 }
  0x7a   :  { %537 = vmatpush.msra.mxu2 %v1609_v39 }
  0x7c   :  { %538 = vmatpush.msra.mxu2 %v1619_v42 }
  0xb1   :  { %v173_v56 = vpop.f32.mrf.mxu0  ;;  %v193_v57 = vpop.f32.mrf.mxu1 }
  0xb2   :  { %v216_v58 = vadd.f32 %v173_v56, %v153_v54  ;;  %v236_v59 = vadd.f32 %v193_v57, %v154_v55  ;;  %v1773_v57 = vperm.slane %v137_v49, 2 }
  0xb4   :  { %v1118_v60 = vmul.f32 -1.442695, %v216_v58  ;;  %v1119_v61 = vmul.f32 -1.442695, %v236_v59 }
  0xb6   :  { %1145 = vpow2.f32 %v1118_v60  ;;  %v152_v60 = vld [vmem:[#allocation3 + $0x10] sm:$0xff] }
  0xb7   :  { %1147 = vpow2.f32 %v1119_v61  ;;  %v155_v51 = vadd.f32 %v152_v60, %v1773_v57 }
  0xbc   :  { %v1146_v62 = vpop.eup %1145 }
  0xbd   :  { %v1148_v63 = vpop.eup %1147  ;;  %v220_v42 = vadd.f32 1.0, %v1146_v62 }
  0xbe   :  { %v240_v41 = vadd.f32 1.0, %v1148_v63 }
  0xbf   :  { %1149 = vrcp.f32 %v220_v42  ;;  %v213_v55 = vpop.f32.mrf.mxu2  ;;  %v232_v56 = vand.u32 2147483648, %v220_v42  ;;  %v230_v59 = vand.u32 2147483647, %v220_v42  ;;  %vm226_vm1 = vweird.f32 %v220_v42 }
  0xc0   :  { %1151 = vrcp.f32 %v240_v41  ;;  %v256_v62 = vadd.f32 %v1771_v52, %v213_v55  ;;  %vm246_vm4 = vweird.f32 %v240_v41 }
  0xc1   :  { %v233_v50 = vor.u32 1.1754944e-38, %v232_v56  ;;  %vm231_vm3 = vcmp.eq.f32.partialorder %v230_v59, 8.507059e+37 }
  0xc5   :  { %v1150_v48 = vpop.eup %1149 }
  0xc6   :  { %v1152_v39 = vpop.eup %1151  ;;  %v222_v38 = vmul.f32 %v1150_v48, %v220_v42  ;;  %vm227_vm0 = vweird.f32 %v1150_v48 }
  0xc7   :  { %v242_v54 = vmul.f32 %v1152_v39, %v240_v41  ;;  %vm228_vm2 = vmor %vm226_vm1, %vm227_vm0  ;;  %vm247_vm5 = vweird.f32 %v1152_v39 }
  0xc8   :  { %v223_v53 = vsub.f32 1.0, %v222_v38  ;;  %vm248_vm6 = vmor %vm246_vm4, %vm247_vm5 }
  0xc9   :  { %v243_v63 = vsub.f32 1.0, %v242_v54 }
  0xca   :  { %v224_v58 = vmul.f32 %v1150_v48, %v223_v53  ;;  %v252_v53 = vand.u32 2147483648, %v240_v41 }
  0xcb   :  { %v244_v35 = vmul.f32 %v1152_v39, %v243_v63 }
  0xcc   :  { %v225_v61 = vadd.f32 %v1150_v48, %v224_v58  ;;  %v250_v58 = vand.u32 2147483647, %v240_v41  ;;  %v253_v42 = vor.u32 1.1754944e-38, %v252_v53  ;;  %v2134_v41 = vld [vmem:[#allocation26_spill] sm:$0xff] }
  0xcd   :  { %v245_v46 = vadd.f32 %v1152_v39, %v244_v35  ;;  %v2131_v35 = vld [vmem:[#allocation25_spill] sm:$0xff] }
  0xce   :  { %v229_v47 = vsel %vm228_vm2, %v1150_v48, %v225_v61  ;;  %vm251_vm7 = vcmp.eq.f32.partialorder %v250_v58, 8.507059e+37  ;;  %v266_v61 = vld [vmem:[#allocation3 + $0x20] sm:$0xff] }
  0xcf   :  { %v234_v38 = vsel %vm231_vm3, %v233_v50, %v229_v47  ;;  %v249_v54 = vsel %vm248_vm6, %v1152_v39, %v245_v46  ;;  %v2133_v39 = vld [vmem:[#allocation20_spill] sm:$0xff]  ;;  %v2136_v46 = vld [vmem:[#allocation22_spill] sm:$0xff]  ;;  %v2137_v47 = vld [vmem:[#allocation27_spill] sm:$0xff] }
  0xd0   :  { %v257_v36 = vmul.f32 %v256_v62, %v234_v38  ;;  %v254_v60 = vsel %vm251_vm7, %v253_v42, %v249_v54  ;;  %v2138_v50 = vld [vmem:[#allocation23_spill] sm:$0xff]  ;;  %v2140_v62 = vld [vmem:[#allocation29_spill] sm:$0xff]  ;;  %v2141_v58 = vld [vmem:[#allocation28_spill] sm:$0xff] }
  0xd1   :  { %v269_v63 = vadd.f32 %v266_v61, %v2140_v62 }
  0xd2   :  { %v258_v49 = vadd.f32 %v257_v36, %v155_v51  ;;  %v2132_v36 = vld [vmem:[#allocation19_spill] sm:$0xff]  ;;  %v2139_v51 = vld [vmem:[#allocation24_spill] sm:$0xff] }
  0xd4   :  { %1153 = vtanh.f32 %v258_v49  ;;  %v265_v49 = vld [vmem:[#allocation3 + $0x18] sm:$0xff] }
  0xd5   :  { %v268_v42 = vadd.f32 %v265_v49, %v2141_v58 }
  0xda   :  { %v1154_v55 = vpop.eup %1153 }
  0xdb   :  { %v260_v56 = vsub.f32 %v1625_v43, %v1154_v55  ;;  %v2135_v43 = vld [vmem:[#allocation21_spill] sm:$0xff] }
  0xdd   :  { %v261_v48 = vmul.f32 %v260_v56, %v254_v60 }
  0xdf   :  { %v1778_v59 = vadd.f32 %v1154_v55, %v261_v48 }
  0xe1   :  { %263 = vst [vmem:[#allocation11] sm:$0xff] %v1778_v59  ;;  %287 = vmatmul.f32.vlgmr.msra.gmra.mxu3 %v1778_v59  ;;  %307 = vmatmul.f32.vlgmr.msrb.gmra.mxu0 %v1778_v59 }
  0xe2   :  { %327 = vmatmul.f32.vlgmr.msrb.gmra.mxu1 %v1778_v59  ;;  %543 = vmatpush.msra.mxu3 %v1520_v12 }
  0xe3   :  { %619 = vmatpush.msrb.mxu0 %v1485_v0  ;;  %639 = vmatpush.msrb.mxu1 %v1487_v1 }
  0xe4   :  { %544 = vmatpush.msra.mxu3 %v1525_v13 }
  0xe5   :  { %620 = vmatpush.msrb.mxu0 %v1489_v2  ;;  %640 = vmatpush.msrb.mxu1 %v1493_v3 }
  0xe6   :  { %545 = vmatpush.msra.mxu3 %v1535_v16 }
  0xe7   :  { %621 = vmatpush.msrb.mxu0 %v1495_v4  ;;  %641 = vmatpush.msrb.mxu1 %v1497_v5 }
  0xe8   :  { %546 = vmatpush.msra.mxu3 %v1545_v19 }
  0xe9   :  { %622 = vmatpush.msrb.mxu0 %v1502_v6  ;;  %642 = vmatpush.msrb.mxu1 %v1504_v7 }
  0xea   :  { %547 = vmatpush.msra.mxu3 %v1555_v22 }
  0xeb   :  { %623 = vmatpush.msrb.mxu0 %v1509_v8  ;;  %643 = vmatpush.msrb.mxu1 %v1511_v9 }
  0xec   :  { %548 = vmatpush.msra.mxu3 %v1565_v25 }
  0xed   :  { %624 = vmatpush.msrb.mxu0 %v1516_v10  ;;  %644 = vmatpush.msrb.mxu1 %v1518_v11 }
  0xee   :  { %549 = vmatpush.msra.mxu3 %v1575_v28 }
  0xef   :  { %625 = vmatpush.msrb.mxu0 %v1527_v14  ;;  %645 = vmatpush.msrb.mxu1 %v1529_v15 }
  0xf0   :  { %550 = vmatpush.msra.mxu3 %v1585_v31 }
  0xf1   :  { %626 = vmatpush.msrb.mxu0 %v1537_v17  ;;  %646 = vmatpush.msrb.mxu1 %v1539_v18 }
  0xf2   :  { %551 = vmatpush.msra.mxu3 %v1595_v34 }
  0xf3   :  { %627 = vmatpush.msrb.mxu0 %v1547_v20  ;;  %647 = vmatpush.msrb.mxu1 %v1549_v21 }
  0xf4   :  { %552 = vmatpush.msra.mxu3 %v1605_v37 }
  0xf5   :  { %628 = vmatpush.msrb.mxu0 %v1557_v23  ;;  %648 = vmatpush.msrb.mxu1 %v1559_v24 }
  0xf6   :  { %553 = vmatpush.msra.mxu3 %v1615_v40 }
  0xf7   :  { %629 = vmatpush.msrb.mxu0 %v1567_v26  ;;  %649 = vmatpush.msrb.mxu1 %v1569_v27 }
  0xf8   :  { %554 = vmatpush.msra.mxu3 %v1628_v44 }
  0xf9   :  { %630 = vmatpush.msrb.mxu0 %v1577_v29  ;;  %650 = vmatpush.msrb.mxu1 %v1579_v30 }
  0xfa   :  { %555 = vmatpush.msra.mxu3 %v1635_v45 }
  0xfb   :  { %631 = vmatpush.msrb.mxu0 %v1587_v32  ;;  %651 = vmatpush.msrb.mxu1 %v1589_v33 }
  0xfc   :  { %556 = vmatpush.msra.mxu3 %v2131_v35 }
  0xfd   :  { %632 = vmatpush.msrb.mxu0 %v2132_v36  ;;  %652 = vmatpush.msrb.mxu1 %v2133_v39 }
  0xfe   :  { %557 = vmatpush.msra.mxu3 %v2134_v41 }
  0xff   :  { %633 = vmatpush.msrb.mxu0 %v2135_v43  ;;  %653 = vmatpush.msrb.mxu1 %v2136_v46 }
 0x100   :  { %558 = vmatpush.msra.mxu3 %v2137_v47 }
 0x101   :  { %634 = vmatpush.msrb.mxu0 %v2138_v50  ;;  %654 = vmatpush.msrb.mxu1 %v2139_v51 }
 0x15e   :  { %v308_v38 = vpop.f32.mrf.mxu0 }
 0x15f   :  { %v351_v53 = vadd.f32 %v308_v38, %v269_v63 }
 0x161   :  { %v1121_v54 = vmul.f32 -1.442695, %v351_v53  ;;  %v328_v53 = vpop.f32.mrf.mxu1 }
 0x163   :  { %1155 = vpow2.f32 %v1121_v54 }
 0x164   :  { %v288_v55 = vpop.f32.mrf.mxu3 }
 0x165   :  { %v331_v56 = vadd.f32 %v288_v55, %v268_v42  ;;  %v267_v42 = vld [vmem:[#allocation3 + $0x28] sm:$0xff] }
 0x167   :  { %v1120_v60 = vmul.f32 -1.442695, %v331_v56 }
 0x169   :  { %1157 = vpow2.f32 %v1120_v60  ;;  %v1156_v48 = vpop.eup %1155 }
 0x16a   :  { %v355_v46 = vadd.f32 1.0, %v1156_v48  ;;  %v270_v48 = vadd.f32 %v267_v42, %v1773_v57 }
 0x16c   :  { %v367_v35 = vand.u32 2147483648, %v355_v46  ;;  %vm361_vm13 = vweird.f32 %v355_v46 }
 0x16f   :  { %v1158_v47 = vpop.eup %1157 }
 0x170   :  { %v335_v50 = vadd.f32 1.0, %v1158_v47  ;;  %v371_v47 = vadd.f32 %v1771_v52, %v328_v53 }
 0x172   :  { %1159 = vrcp.f32 %v335_v50  ;;  %v347_v63 = vand.u32 2147483648, %v335_v50  ;;  %v345_v49 = vand.u32 2147483647, %v335_v50  ;;  %vm341_vm9 = vweird.f32 %v335_v50 }
 0x173   :  { %1161 = vrcp.f32 %v355_v46 }
 0x174   :  { %v348_v56 = vor.u32 1.1754944e-38, %v347_v63  ;;  %vm346_vm11 = vcmp.eq.f32.partialorder %v345_v49, 8.507059e+37  ;;  %v368_v63 = vor.u32 1.1754944e-38, %v367_v35  ;;  %v381_v35 = vld [vmem:[#allocation3 + $0x30] sm:$0xff] }
 0x178   :  { %v1160_v51 = vpop.eup %1159 }
 0x179   :  { %v1162_v43 = vpop.eup %1161  ;;  %v337_v61 = vmul.f32 %v1160_v51, %v335_v50  ;;  %vm342_vm8 = vweird.f32 %v1160_v51 }
 0x17a   :  { %v357_v41 = vmul.f32 %v1162_v43, %v355_v46  ;;  %vm343_vm10 = vmor %vm341_vm9, %vm342_vm8  ;;  %vm362_vm12 = vweird.f32 %v1162_v43 }
 0x17b   :  { %v338_v62 = vsub.f32 1.0, %v337_v61  ;;  %vm363_vm14 = vmor %vm361_vm13, %vm362_vm12 }
 0x17c   :  { %v358_v55 = vsub.f32 1.0, %v357_v41 }
 0x17d   :  { %v339_v38 = vmul.f32 %v1160_v51, %v338_v62 }
 0x17e   :  { %v359_v39 = vmul.f32 %v1162_v43, %v358_v55 }
 0x17f   :  { %v340_v54 = vadd.f32 %v1160_v51, %v339_v38  ;;  %v365_v38 = vand.u32 2147483647, %v355_v46  ;;  %v2152_v46 = vld [vmem:[#allocation29_spill] sm:$0xff] }
 0x180   :  { %v360_v62 = vadd.f32 %v1162_v43, %v359_v39  ;;  %v2151_v39 = vld [vmem:[#allocation28_spill] sm:$0xff] }
 0x181   :  { %v344_v60 = vsel %vm343_vm10, %v1160_v51, %v340_v54  ;;  %vm366_vm15 = vcmp.eq.f32.partialorder %v365_v38, 8.507059e+37 }
 0x182   :  { %v349_v58 = vsel %vm346_vm11, %v348_v56, %v344_v60  ;;  %v364_v41 = vsel %vm363_vm14, %v1162_v43, %v360_v62  ;;  %v384_v43 = vadd.f32 %v381_v35, %v2151_v39 }
 0x183   :  { %v372_v61 = vmul.f32 %v371_v47, %v349_v58  ;;  %v369_v49 = vsel %vm366_vm15, %v368_v63, %v364_v41 }
 0x185   :  { %v373_v36 = vadd.f32 %v372_v61, %v270_v48 }
 0x187   :  { %1163 = vtanh.f32 %v373_v36  ;;  %v382_v36 = vld [vmem:[#allocation3 + $0x38] sm:$0xff] }
 0x188   :  { %v385_v58 = vadd.f32 %v382_v36, %v2152_v46 }
 0x18d   :  { %v1164_v50 = vpop.eup %1163 }
 0x18e   :  { %v375_v51 = vsub.f32 %v1778_v59, %v1164_v50  ;;  %v2150_v59 = vld [vmem:[#allocation24_spill] sm:$0xff] }
 0x190   :  { %v376_v53 = vmul.f32 %v375_v51, %v369_v49 }
 0x192   :  { %v1837_v42 = vadd.f32 %v1164_v50, %v376_v53 }
 0x194   :  { %379 = vst [vmem:[#allocation11 + $0x8] sm:$0xff] %v1837_v42  ;;  %403 = vmatmul.f32.vlgmr.msrb.gmra.mxu2 %v1837_v42  ;;  %423 = vmatmul.f32.vlgmr.msrb.gmra.mxu3 %v1837_v42 }
 0x195   :  { %443 = vmatmul.f32.vlgmr.msra.gmra.mxu0 %v1837_v42  ;;  %659 = vmatpush.msrb.mxu2 %v1520_v12 }
 0x196   :  { %735 = vmatpush.msrb.mxu3 %v1485_v0  ;;  %755 = vmatpush.msra.mxu0 %v1487_v1  ;;  %v2142_v0 = vld [vmem:[#allocation25_spill] sm:$0xff]  ;;  %v2143_v1 = vld [vmem:[#allocation19_spill] sm:$0xff] }
 0x197   :  { %660 = vmatpush.msrb.mxu2 %v1525_v13 }
 0x198   :  { %736 = vmatpush.msrb.mxu3 %v1489_v2  ;;  %756 = vmatpush.msra.mxu0 %v1493_v3  ;;  %v2144_v2 = vld [vmem:[#allocation20_spill] sm:$0xff]  ;;  %v2145_v3 = vld [vmem:[#allocation26_spill] sm:$0xff] }
 0x199   :  { %661 = vmatpush.msrb.mxu2 %v1535_v16 }
 0x19a   :  { %737 = vmatpush.msrb.mxu3 %v1495_v4  ;;  %757 = vmatpush.msra.mxu0 %v1497_v5  ;;  %v2146_v4 = vld [vmem:[#allocation21_spill] sm:$0xff]  ;;  %v2147_v5 = vld [vmem:[#allocation22_spill] sm:$0xff] }
 0x19b   :  { %662 = vmatpush.msrb.mxu2 %v1545_v19 }
 0x19c   :  { %738 = vmatpush.msrb.mxu3 %v1502_v6  ;;  %758 = vmatpush.msra.mxu0 %v1504_v7  ;;  %v2148_v6 = vld [vmem:[#allocation27_spill] sm:$0xff] }
 0x19d   :  { %663 = vmatpush.msrb.mxu2 %v1555_v22  ;;  %v2149_v7 = vld [vmem:[#allocation23_spill] sm:$0xff] }
 0x19e   :  { %739 = vmatpush.msrb.mxu3 %v1509_v8  ;;  %759 = vmatpush.msra.mxu0 %v1511_v9 }
 0x19f   :  { %664 = vmatpush.msrb.mxu2 %v1565_v25 }
 0x1a0   :  { %740 = vmatpush.msrb.mxu3 %v1516_v10  ;;  %760 = vmatpush.msra.mxu0 %v1518_v11 }
 0x1a1   :  { %665 = vmatpush.msrb.mxu2 %v1575_v28 }
 0x1a2   :  { %741 = vmatpush.msrb.mxu3 %v1527_v14  ;;  %761 = vmatpush.msra.mxu0 %v1529_v15 }
 0x1a3   :  { %666 = vmatpush.msrb.mxu2 %v1585_v31 }
 0x1a4   :  { %742 = vmatpush.msrb.mxu3 %v1537_v17  ;;  %762 = vmatpush.msra.mxu0 %v1539_v18 }
 0x1a5   :  { %667 = vmatpush.msrb.mxu2 %v1595_v34 }
 0x1a6   :  { %743 = vmatpush.msrb.mxu3 %v1547_v20  ;;  %763 = vmatpush.msra.mxu0 %v1549_v21 }
 0x1a7   :  { %668 = vmatpush.msrb.mxu2 %v1605_v37 }
 0x1a8   :  { %744 = vmatpush.msrb.mxu3 %v1557_v23  ;;  %764 = vmatpush.msra.mxu0 %v1559_v24 }
 0x1a9   :  { %669 = vmatpush.msrb.mxu2 %v1615_v40 }
 0x1aa   :  { %745 = vmatpush.msrb.mxu3 %v1567_v26  ;;  %765 = vmatpush.msra.mxu0 %v1569_v27 }
 0x1ab   :  { %670 = vmatpush.msrb.mxu2 %v1628_v44 }
 0x1ac   :  { %746 = vmatpush.msrb.mxu3 %v1577_v29  ;;  %766 = vmatpush.msra.mxu0 %v1579_v30 }
 0x1ad   :  { %671 = vmatpush.msrb.mxu2 %v1635_v45 }
 0x1ae   :  { %747 = vmatpush.msrb.mxu3 %v1587_v32  ;;  %767 = vmatpush.msra.mxu0 %v1589_v33 }
 0x1af   :  { %672 = vmatpush.msrb.mxu2 %v2142_v0 }
 0x1b0   :  { %748 = vmatpush.msrb.mxu3 %v2143_v1  ;;  %768 = vmatpush.msra.mxu0 %v2144_v2 }
 0x1b1   :  { %673 = vmatpush.msrb.mxu2 %v2145_v3 }
 0x1b2   :  { %749 = vmatpush.msrb.mxu3 %v2146_v4  ;;  %769 = vmatpush.msra.mxu0 %v2147_v5 }
 0x1b3   :  { %674 = vmatpush.msrb.mxu2 %v2148_v6 }
 0x1b4   :  { %750 = vmatpush.msrb.mxu3 %v2149_v7  ;;  %770 = vmatpush.msra.mxu0 %v2150_v59 }
 0x217   :  { %v404_v54 = vpop.f32.mrf.mxu2  ;;  %v424_v55 = vpop.f32.mrf.mxu3 }
 0x218   :  { %v447_v56 = vadd.f32 %v404_v54, %v384_v43  ;;  %v467_v47 = vadd.f32 %v424_v55, %v385_v58  ;;  %v444_v58 = vpop.f32.mrf.mxu0  ;;  %v383_v54 = vld [vmem:[#allocation3 + $0x40] sm:$0xff] }
 0x21a   :  { %v1122_v60 = vmul.f32 -1.442695, %v447_v56  ;;  %v1123_v48 = vmul.f32 -1.442695, %v467_v47 }
 0x21c   :  { %1165 = vpow2.f32 %v1122_v60  ;;  %v487_v60 = vadd.f32 %v1771_v52, %v444_v58 }
 0x21d   :  { %1167 = vpow2.f32 %v1123_v48 }
 0x222   :  { %v1166_v61 = vpop.eup %1165 }
 0x223   :  { %v1168_v62 = vpop.eup %1167  ;;  %v451_v38 = vadd.f32 1.0, %v1166_v61  ;;  %v386_v61 = vadd.f32 %v383_v54, %v1773_v57 }
 0x224   :  { %v471_v41 = vadd.f32 1.0, %v1168_v62 }
 0x225   :  { %1169 = vrcp.f32 %v451_v38  ;;  %v463_v53 = vand.u32 2147483648, %v451_v38  ;;  %v461_v43 = vand.u32 2147483647, %v451_v38  ;;  %vm457_vm1 = vweird.f32 %v451_v38 }
 0x226   :  { %1171 = vrcp.f32 %v471_v41  ;;  %v483_v59 = vand.u32 2147483648, %v471_v41  ;;  %vm477_vm5 = vweird.f32 %v471_v41 }
 0x227   :  { %v464_v56 = vor.u32 1.1754944e-38, %v463_v53  ;;  %vm462_vm3 = vcmp.eq.f32.partialorder %v461_v43, 8.507059e+37 }
 0x22b   :  { %v1170_v50 = vpop.eup %1169 }
 0x22c   :  { %v1172_v63 = vpop.eup %1171  ;;  %v453_v51 = vmul.f32 %v1170_v50, %v451_v38  ;;  %vm458_vm0 = vweird.f32 %v1170_v50 }
 0x22d   :  { %v473_v35 = vmul.f32 %v1172_v63, %v471_v41  ;;  %vm459_vm2 = vmor %vm457_vm1, %vm458_vm0  ;;  %vm478_vm4 = vweird.f32 %v1172_v63 }
 0x22e   :  { %v454_v49 = vsub.f32 1.0, %v453_v51  ;;  %vm479_vm6 = vmor %vm477_vm5, %vm478_vm4 }
 0x22f   :  { %v474_v47 = vsub.f32 1.0, %v473_v35  ;;  %v484_v35 = vor.u32 1.1754944e-38, %v483_v59  ;;  %v1906_v59 = vld [vmem:[#allocation8 + $0x170] sm:$0xff] }
 0x230   :  { %v455_v36 = vmul.f32 %v1170_v50, %v454_v49 }
 0x231   :  { %v475_v46 = vmul.f32 %v1172_v63, %v474_v47 }
 0x232   :  { %v456_v55 = vadd.f32 %v1170_v50, %v455_v36  ;;  %v481_v36 = vand.u32 2147483647, %v471_v41  ;;  %v1920_v41 = vld [vmem:[#allocation8 + $0x140] sm:$0xff] }
 0x233   :  { %v476_v49 = vadd.f32 %v1172_v63, %v475_v46  ;;  %v1913_v46 = vld [vmem:[#allocation8 + $0x158] sm:$0xff] }
 0x234   :  { %v460_v48 = vsel %vm459_vm2, %v1170_v50, %v456_v55  ;;  %vm482_vm7 = vcmp.eq.f32.partialorder %v481_v36, 8.507059e+37 }
 0x235   :  { %v465_v62 = vsel %vm462_vm3, %v464_v56, %v460_v48  ;;  %v480_v38 = vsel %vm479_vm6, %v1172_v63, %v476_v49  ;;  %v1927_v63 = vld [vmem:[#allocation8 + $0x128] sm:$0xff] }
 0x236   :  { %v488_v51 = vmul.f32 %v487_v60, %v465_v62  ;;  %v485_v43 = vsel %vm482_vm7, %v484_v35, %v480_v38  ;;  %v1977_v38 = vld [vmem:[#allocation8 + $0x178] sm:$0xff]  ;;  %v1987_v35 = vld [vmem:[#allocation8 + $0x148] sm:$0xff] }
 0x238   :  { %v489_v39 = vadd.f32 %v488_v51, %v386_v61 }
 0x23a   :  { %1173 = vtanh.f32 %v489_v39  ;;  %v1903_v39 = vld [vmem:[#allocation8 + $0x168] sm:$0xff] }
 0x240   :  { %v1174_v53 = vpop.eup %1173 }
 0x241   :  { %v491_v50 = vsub.f32 %v1837_v42, %v1174_v53  ;;  %v1910_v42 = vld [vmem:[#allocation8 + $0x150] sm:$0xff] }
 0x243   :  { %v492_v58 = vmul.f32 %v491_v50, %v485_v43  ;;  %v1992_v50 = vld [vmem:[#allocation8 + $0x130] sm:$0xff]  ;;  %v1997_v43 = vld [vmem:[#allocation8 + $0x118] sm:$0xff] }
 0x245   :  { %v1896_v54 = vadd.f32 %v1174_v53, %v492_v58  ;;  %v1982_v53 = vld [vmem:[#allocation8 + $0x160] sm:$0xff]  ;;  %v1238_v58 = vld [vmem:[#allocation8 + $0x108] sm:$0xff] }
 0x247   :  { %495 = vst [vmem:[#allocation11 + $0x10] sm:$0xff] %v1896_v54  ;;  %519 = vmatmul.f32.vlgmr.msra.gmra.mxu1 %v1896_v54  ;;  %539 = vmatmul.f32.vlgmr.msra.gmra.mxu2 %v1896_v54 }
 0x248   :  { %559 = vmatmul.f32.vlgmr.msra.gmra.mxu3 %v1896_v54  ;;  %775 = vmatpush.msra.mxu1 %v1520_v12  ;;  %v1917_v12 = vld [vmem:[#allocation8 + $0x138] sm:$0xff] }
 0x249   :  { %851 = vmatpush.msra.mxu2 %v1903_v39  ;;  %871 = vmatpush.msra.mxu3 %v1906_v59 }
 0x24a   :  { %776 = vmatpush.msra.mxu1 %v1525_v13  ;;  %v1924_v13 = vld [vmem:[#allocation8 + $0x120] sm:$0xff] }
 0x24b   :  { %852 = vmatpush.msra.mxu2 %v1910_v42  ;;  %872 = vmatpush.msra.mxu3 %v1913_v46 }
 0x24c   :  { %777 = vmatpush.msra.mxu1 %v1535_v16 }
 0x24d   :  { %853 = vmatpush.msra.mxu2 %v1917_v12  ;;  %873 = vmatpush.msra.mxu3 %v1920_v41 }
 0x24e   :  { %778 = vmatpush.msra.mxu1 %v1545_v19 }
 0x24f   :  { %854 = vmatpush.msra.mxu2 %v1924_v13  ;;  %874 = vmatpush.msra.mxu3 %v1927_v63 }
 0x250   :  { %779 = vmatpush.msra.mxu1 %v1555_v22 }
 0x251   :  { %855 = vmatpush.msra.mxu2 %v1509_v8  ;;  %875 = vmatpush.msra.mxu3 %v1511_v9  ;;  %v2153_v8 = vld [vmem:[#allocation24_spill] sm:$0xff]  ;;  %v497_v9 = vld [vmem:[#allocation3 + $0x48] sm:$0xff] }
 0x252   :  { %780 = vmatpush.msra.mxu1 %v1565_v25 }
 0x253   :  { %856 = vmatpush.msra.mxu2 %v1516_v10  ;;  %876 = vmatpush.msra.mxu3 %v1518_v11  ;;  %v2154_v10 = vld [vmem:[#allocation28_spill] sm:$0xff] }
 0x254   :  { %781 = vmatpush.msra.mxu1 %v1575_v28  ;;  %v500_v11 = vadd.f32 %v497_v9, %v2154_v10  ;;  %v2009_v9 = vld [vmem:[#allocation8 + $0xb8] sm:$0xff] }
 0x255   :  { %857 = vmatpush.msra.mxu2 %v1527_v14  ;;  %877 = vmatpush.msra.mxu3 %v1529_v15  ;;  %v498_v15 = vld [vmem:[#allocation3 + $0x50] sm:$0xff] }
 0x256   :  { %782 = vmatpush.msra.mxu1 %v1585_v31  ;;  %v499_v31 = vld [vmem:[#allocation3 + $0x58] sm:$0xff] }
 0x257   :  { %858 = vmatpush.msra.mxu2 %v1537_v17  ;;  %878 = vmatpush.msra.mxu3 %v1539_v18  ;;  %v2155_v18 = vld [vmem:[#allocation29_spill] sm:$0xff] }
 0x258   :  { %783 = vmatpush.msra.mxu1 %v1595_v34  ;;  %v501_v19 = vadd.f32 %v498_v15, %v2155_v18  ;;  %v2012_v15 = vld [vmem:[#allocation8 + $0xa0] sm:$0xff] }
 0x259   :  { %859 = vmatpush.msra.mxu2 %v1547_v20  ;;  %879 = vmatpush.msra.mxu3 %v1549_v21 }
 0x25a   :  { %784 = vmatpush.msra.mxu1 %v1605_v37 }
 0x25b   :  { %860 = vmatpush.msra.mxu2 %v1557_v23  ;;  %880 = vmatpush.msra.mxu3 %v1559_v24 }
 0x25c   :  { %785 = vmatpush.msra.mxu1 %v1615_v40 }
 0x25d   :  { %861 = vmatpush.msra.mxu2 %v1567_v26  ;;  %881 = vmatpush.msra.mxu3 %v1569_v27 }
 0x25e   :  { %786 = vmatpush.msra.mxu1 %v1628_v44 }
 0x25f   :  { %862 = vmatpush.msra.mxu2 %v1577_v29  ;;  %882 = vmatpush.msra.mxu3 %v1579_v30 }
 0x260   :  { %787 = vmatpush.msra.mxu1 %v1635_v45  ;;  %v502_v45 = vadd.f32 %v499_v31, %v1773_v57  ;;  %v2027_v31 = vld [vmem:[#allocation8 + $0x28] sm:$0xff] }
 0x261   :  { %863 = vmatpush.msra.mxu2 %v1587_v32  ;;  %883 = vmatpush.msra.mxu3 %v1589_v33 }
 0x262   :  { %788 = vmatpush.msra.mxu1 %v2142_v0 }
 0x263   :  { %864 = vmatpush.msra.mxu2 %v2143_v1  ;;  %884 = vmatpush.msra.mxu3 %v2144_v2 }
 0x264   :  { %789 = vmatpush.msra.mxu1 %v2145_v3 }
 0x265   :  { %865 = vmatpush.msra.mxu2 %v2146_v4  ;;  %885 = vmatpush.msra.mxu3 %v2147_v5 }
 0x266   :  { %790 = vmatpush.msra.mxu1 %v2148_v6 }
 0x267   :  { %866 = vmatpush.msra.mxu2 %v2149_v7  ;;  %886 = vmatpush.msra.mxu3 %v2153_v8  ;;  %v1248_v8 = vld [vmem:[#allocation8 + $0xc8] sm:$0xff] }
 0x2c4   :  { %v520_v14 = vpop.f32.mrf.mxu1 }
 0x2c5   :  { %v563_v16 = vadd.f32 %v520_v14, %v500_v11  ;;  %v1250_v11 = vld [vmem:[#allocation8 + $0xa8] sm:$0xff]  ;;  %v1251_v14 = vld [vmem:[#allocation8 + $0xb0] sm:$0xff] }
 0x2c7   :  { %v1124_v17 = vmul.f32 -1.442695, %v563_v16  ;;  %v1253_v16 = vld [vmem:[#allocation8 + $0x90] sm:$0xff] }
 0x2c9   :  { %1175 = vpow2.f32 %v1124_v17  ;;  %v1254_v17 = vld [vmem:[#allocation8 + $0x98] sm:$0xff] }
 0x2ca   :  { %v540_v20 = vpop.f32.mrf.mxu2 }
 0x2cb   :  { %v583_v21 = vadd.f32 %v540_v20, %v501_v19  ;;  %v560_v37 = vpop.f32.mrf.mxu3  ;;  %v2015_v19 = vld [vmem:[#allocation8 + $0x88] sm:$0xff]  ;;  %v1256_v20 = vld [vmem:[#allocation8 + $0x78] sm:$0xff] }
 0x2cc   :  { %v603_v3 = vadd.f32 %v1771_v52, %v560_v37  ;;  %v1271_v37 = vld [vmem:[#allocation8] sm:$0xff] }
 0x2cd   :  { %v1125_v22 = vmul.f32 -1.442695, %v583_v21  ;;  %v1257_v21 = vld [vmem:[#allocation8 + $0x80] sm:$0xff] }
 0x2cf   :  { %v1176_v23 = vpop.eup %1175  ;;  %1177 = vpow2.f32 %v1125_v22  ;;  %v2018_v22 = vld [vmem:[#allocation8 + $0x70] sm:$0xff] }
 0x2d0   :  { %v567_v24 = vadd.f32 1.0, %v1176_v23  ;;  %v1259_v23 = vld [vmem:[#allocation8 + $0x60] sm:$0xff] }
 0x2d2   :  { %1179 = vrcp.f32 %v567_v24  ;;  %v579_v30 = vand.u32 2147483648, %v567_v24  ;;  %v577_v33 = vand.u32 2147483647, %v567_v24  ;;  %vm573_vm9 = vweird.f32 %v567_v24 }
 0x2d4   :  { %v580_v0 = vor.u32 1.1754944e-38, %v579_v30  ;;  %vm578_vm11 = vcmp.eq.f32.partialorder %v577_v33, 8.507059e+37  ;;  %v1266_v30 = vld [vmem:[#allocation8 + $0x38] sm:$0xff]  ;;  %v1269_v33 = vld [vmem:[#allocation8 + $0x20] sm:$0xff] }
 0x2d5   :  { %v1178_v25 = vpop.eup %1177 }
 0x2d6   :  { %v587_v26 = vadd.f32 1.0, %v1178_v25  ;;  %v2021_v25 = vld [vmem:[#allocation8 + $0x58] sm:$0xff] }
 0x2d8   :  { %v1180_v27 = vpop.eup %1179  ;;  %1181 = vrcp.f32 %v587_v26  ;;  %v599_v56 = vand.u32 2147483648, %v587_v26  ;;  %vm593_vm13 = vweird.f32 %v587_v26  ;;  %v597_v47 = vand.u32 2147483647, %v587_v26 }
 0x2d9   :  { %v569_v28 = vmul.f32 %v1180_v27, %v567_v24  ;;  %vm574_vm8 = vweird.f32 %v1180_v27  ;;  %v1260_v24 = vld [vmem:[#allocation8 + $0x68] sm:$0xff] }
 0x2da   :  { %vm575_vm10 = vmor %vm573_vm9, %vm574_vm8  ;;  %v600_v61 = vor.u32 1.1754944e-38, %v599_v56  ;;  %vm598_vm15 = vcmp.eq.f32.partialorder %v597_v47, 8.507059e+37 }
 0x2db   :  { %v570_v29 = vsub.f32 1.0, %v569_v28  ;;  %v2024_v28 = vld [vmem:[#allocation8 + $0x40] sm:$0xff] }
 0x2dd   :  { %v571_v32 = vmul.f32 %v1180_v27, %v570_v29  ;;  %v1265_v29 = vld [vmem:[#allocation8 + $0x30] sm:$0xff] }
 0x2de   :  { %v1182_v34 = vpop.eup %1181 }
 0x2df   :  { %v589_v40 = vmul.f32 %v1182_v34, %v587_v26  ;;  %v572_v44 = vadd.f32 %v1180_v27, %v571_v32  ;;  %vm594_vm12 = vweird.f32 %v1182_v34  ;;  %v1262_v26 = vld [vmem:[#allocation8 + $0x48] sm:$0xff]  ;;  %v1268_v32 = vld [vmem:[#allocation8 + $0x18] sm:$0xff] }
 0x2e0   :  { %vm595_vm14 = vmor %vm593_vm13, %vm594_vm12 }
 0x2e1   :  { %v590_v1 = vsub.f32 1.0, %v589_v40  ;;  %v576_v2 = vsel %vm575_vm10, %v1180_v27, %v572_v44  ;;  %v1263_v27 = vld [vmem:[#allocation8 + $0x50] sm:$0xff]  ;;  %v1272_v40 = vld [vmem:[#allocation8 + $0x8] sm:$0xff]  ;;  %v613_v44 = vld [vmem:[#allocation3 + $0x60] sm:$0xff] }
 0x2e2   :  { %v581_v4 = vsel %vm578_vm11, %v580_v0, %v576_v2  ;;  %v616_v0 = vadd.f32 %v613_v44, %v2154_v10 }
 0x2e3   :  { %v604_v5 = vmul.f32 %v603_v3, %v581_v4  ;;  %v591_v6 = vmul.f32 %v1182_v34, %v590_v1 }
 0x2e5   :  { %v605_v7 = vadd.f32 %v604_v5, %v502_v45  ;;  %v592_v55 = vadd.f32 %v1182_v34, %v591_v6  ;;  %v614_v45 = vld [vmem:[#allocation3 + $0x68] sm:$0xff] }
 0x2e6   :  { %v617_v1 = vadd.f32 %v614_v45, %v2155_v18 }
 0x2e7   :  { %1183 = vtanh.f32 %v605_v7  ;;  %v596_v60 = vsel %vm595_vm14, %v1182_v34, %v592_v55  ;;  %v2030_v34 = vld [vmem:[#allocation8 + $0x10] sm:$0xff] }
 0x2e8   :  { %v601_v51 = vsel %vm598_vm15, %v600_v61, %v596_v60 }
 0x2ed   :  { %v1184_v48 = vpop.eup %1183 }
 0x2ee   :  { %v607_v62 = vsub.f32 %v1896_v54, %v1184_v48  ;;  %v1239_v54 = vld [vmem:[#allocation8 + $0x110] sm:$0xff] }
 0x2f0   :  { %v608_v49 = vmul.f32 %v607_v62, %v601_v51 }
 0x2f2   :  { %v1971_v36 = vadd.f32 %v1184_v48, %v608_v49 }
 0x2f4   :  { %611 = vst [vmem:[#allocation11 + $0x18] sm:$0xff] %v1971_v36  ;;  %635 = vmatmul.f32.vlgmr.msrb.gmra.mxu0 %v1971_v36  ;;  %655 = vmatmul.f32.vlgmr.msrb.gmra.mxu1 %v1971_v36 }
 0x2f5   :  { %675 = vmatmul.f32.vlgmr.msrb.gmra.mxu2 %v1971_v36  ;;  %891 = vmatpush.msrb.mxu0 %v1977_v38 }
 0x2f6   :  { %967 = vmatpush.msrb.mxu1 %v1903_v39  ;;  %987 = vmatpush.msrb.mxu2 %v1906_v59  ;;  %v2000_v39 = vld [vmem:[#allocation8 + $0x100] sm:$0xff]  ;;  %v1241_v59 = vld [vmem:[#allocation8 + $0xf0] sm:$0xff] }
 0x2f7   :  { %892 = vmatpush.msrb.mxu0 %v1982_v53 }
 0x2f8   :  { %968 = vmatpush.msrb.mxu1 %v1910_v42  ;;  %988 = vmatpush.msrb.mxu2 %v1913_v46  ;;  %v1242_v42 = vld [vmem:[#allocation8 + $0xf8] sm:$0xff]  ;;  %v2003_v46 = vld [vmem:[#allocation8 + $0xe8] sm:$0xff] }
 0x2f9   :  { %893 = vmatpush.msrb.mxu0 %v1987_v35 }
 0x2fa   :  { %969 = vmatpush.msrb.mxu1 %v1917_v12  ;;  %989 = vmatpush.msrb.mxu2 %v1920_v41  ;;  %v1244_v12 = vld [vmem:[#allocation8 + $0xd8] sm:$0xff]  ;;  %v1245_v41 = vld [vmem:[#allocation8 + $0xe0] sm:$0xff] }
 0x2fb   :  { %894 = vmatpush.msrb.mxu0 %v1992_v50 }
 0x2fc   :  { %970 = vmatpush.msrb.mxu1 %v1924_v13  ;;  %990 = vmatpush.msrb.mxu2 %v1927_v63  ;;  %v2006_v13 = vld [vmem:[#allocation8 + $0xd0] sm:$0xff]  ;;  %v1247_v63 = vld [vmem:[#allocation8 + $0xc0] sm:$0xff] }
 0x2fd   :  { %895 = vmatpush.msrb.mxu0 %v1997_v43 }
 0x2fe   :  { %971 = vmatpush.msrb.mxu1 %v1238_v58  ;;  %991 = vmatpush.msrb.mxu2 %v1239_v54 }
 0x2ff   :  { %896 = vmatpush.msrb.mxu0 %v2000_v39 }
 0x300   :  { %972 = vmatpush.msrb.mxu1 %v1241_v59  ;;  %992 = vmatpush.msrb.mxu2 %v1242_v42  ;;  %v615_v42 = vld [vmem:[#allocation3 + $0x70] sm:$0xff] }
 0x301   :  { %897 = vmatpush.msrb.mxu0 %v2003_v46 }
 0x302   :  { %973 = vmatpush.msrb.mxu1 %v1244_v12  ;;  %993 = vmatpush.msrb.mxu2 %v1245_v41 }
 0x303   :  { %898 = vmatpush.msrb.mxu0 %v2006_v13 }
 0x304   :  { %974 = vmatpush.msrb.mxu1 %v1247_v63  ;;  %994 = vmatpush.msrb.mxu2 %v1248_v8 }
 0x305   :  { %899 = vmatpush.msrb.mxu0 %v2009_v9 }
 0x306   :  { %975 = vmatpush.msrb.mxu1 %v1250_v11  ;;  %995 = vmatpush.msrb.mxu2 %v1251_v14  ;;  %v618_v11 = vadd.f32 %v615_v42, %v1773_v57 }
 0x307   :  { %900 = vmatpush.msrb.mxu0 %v2012_v15 }
 0x308   :  { %976 = vmatpush.msrb.mxu1 %v1253_v16  ;;  %996 = vmatpush.msrb.mxu2 %v1254_v17 }
 0x309   :  { %901 = vmatpush.msrb.mxu0 %v2015_v19 }
 0x30a   :  { %977 = vmatpush.msrb.mxu1 %v1256_v20  ;;  %997 = vmatpush.msrb.mxu2 %v1257_v21 }
 0x30b   :  { %902 = vmatpush.msrb.mxu0 %v2018_v22 }
 0x30c   :  { %978 = vmatpush.msrb.mxu1 %v1259_v23  ;;  %998 = vmatpush.msrb.mxu2 %v1260_v24 }
 0x30d   :  { %903 = vmatpush.msrb.mxu0 %v2021_v25 }
 0x30e   :  { %979 = vmatpush.msrb.mxu1 %v1262_v26  ;;  %999 = vmatpush.msrb.mxu2 %v1263_v27 }
 0x30f   :  { %904 = vmatpush.msrb.mxu0 %v2024_v28 }
 0x310   :  { %980 = vmatpush.msrb.mxu1 %v1265_v29  ;;  %1000 = vmatpush.msrb.mxu2 %v1266_v30 }
 0x311   :  { %905 = vmatpush.msrb.mxu0 %v2027_v31 }
 0x312   :  { %981 = vmatpush.msrb.mxu1 %v1268_v32  ;;  %1001 = vmatpush.msrb.mxu2 %v1269_v33 }
 0x313   :  { %906 = vmatpush.msrb.mxu0 %v2030_v34 }
 0x314   :  { %982 = vmatpush.msrb.mxu1 %v1271_v37  ;;  %1002 = vmatpush.msrb.mxu2 %v1272_v40 }
 0x371   :  { %v636_v2 = vpop.f32.mrf.mxu0  ;;  %v656_v3 = vpop.f32.mrf.mxu1 }
 0x372   :  { %v679_v4 = vadd.f32 %v636_v2, %v616_v0  ;;  %v699_v5 = vadd.f32 %v656_v3, %v617_v1 }
 0x374   :  { %v1126_v6 = vmul.f32 -1.442695, %v679_v4  ;;  %v1127_v7 = vmul.f32 -1.442695, %v699_v5  ;;  %v731_v4 = vld [vmem:[#allocation3 + $0x88] sm:$0xff] }
 0x376   :  { %1185 = vpow2.f32 %v1126_v6 }
 0x377   :  { %1187 = vpow2.f32 %v1127_v7 }
 0x378   :  { %v676_v12 = vpop.f32.mrf.mxu2 }
 0x379   :  { %v719_v16 = vadd.f32 %v1771_v52, %v676_v12 }
 0x37c   :  { %v1186_v55 = vpop.eup %1185 }
 0x37d   :  { %v1188_v56 = vpop.eup %1187  ;;  %v683_v47 = vadd.f32 1.0, %v1186_v55  ;;  %v2065_v55 = vld [vmem:[%s2095_s4] ss:$0 sm:$0xff]  ;;  %s1434_s4 = smov [#allocation11]  }
 0x37e   :  { %v703_v60 = vadd.f32 1.0, %v1188_v56  ;;  %s1085_s19 = sshll.u32 %s1434_s4, 4  ;;  %s1086_s19 = int_to_ptr.vmem [resolvable:$true] %s1085_s19 }
 0x37f   :  { %1189 = vrcp.f32 %v683_v47  ;;  %v695_v58 = vand.u32 2147483648, %v683_v47  ;;  %v693_v59 = vand.u32 2147483647, %v683_v47  ;;  %vm689_vm1 = vweird.f32 %v683_v47 }
 0x380   :  { %1191 = vrcp.f32 %v703_v60  ;;  %v715_v26 = vand.u32 2147483648, %v703_v60  ;;  %vm709_vm5 = vweird.f32 %v703_v60  ;;  %v713_v27 = vand.u32 2147483647, %v703_v60 }
 0x381   :  { %v696_v8 = vor.u32 1.1754944e-38, %v695_v58  ;;  %vm694_vm3 = vcmp.eq.f32.partialorder %v693_v59, 8.507059e+37 }
 0x382   :  { %v716_v32 = vor.u32 1.1754944e-38, %v715_v26  ;;  %vm714_vm7 = vcmp.eq.f32.partialorder %v713_v27, 8.507059e+37 }
 0x385   :  { %v1190_v48 = vpop.eup %1189 }
 0x386   :  { %v1192_v61 = vpop.eup %1191  ;;  %v685_v62 = vmul.f32 %v1190_v48, %v683_v47  ;;  %vm690_vm0 = vweird.f32 %v1190_v48 }
 0x387   :  { %v705_v49 = vmul.f32 %v1192_v61, %v703_v60  ;;  %vm691_vm2 = vmor %vm689_vm1, %vm690_vm0  ;;  %vm710_vm4 = vweird.f32 %v1192_v61  ;;  %v734_v60 = vadd.f32 %v731_v4, %v1773_v57 }
 0x388   :  { %v686_v51 = vsub.f32 1.0, %v685_v62  ;;  %vm711_vm6 = vmor %vm709_vm5, %vm710_vm4 }
 0x389   :  { %v706_v63 = vsub.f32 1.0, %v705_v49 }
 0x38a   :  { %v687_v54 = vmul.f32 %v1190_v48, %v686_v51 }
 0x38b   :  { %v707_v21 = vmul.f32 %v1192_v61, %v706_v63 }
 0x38c   :  { %v688_v41 = vadd.f32 %v1190_v48, %v687_v54 }
 0x38d   :  { %v708_v24 = vadd.f32 %v1192_v61, %v707_v21 }
 0x38e   :  { %v692_v14 = vsel %vm691_vm2, %v1190_v48, %v688_v41 }
 0x38f   :  { %v697_v17 = vsel %vm694_vm3, %v696_v8, %v692_v14  ;;  %v712_v29 = vsel %vm711_vm6, %v1192_v61, %v708_v24  ;;  %v845_v14 = vld [vmem:[#allocation3 + $0x90] sm:$0xff] }
 0x390   :  { %v720_v20 = vmul.f32 %v719_v16, %v697_v17  ;;  %v717_v37 = vsel %vm714_vm7, %v716_v32, %v712_v29  ;;  %v846_v16 = vld [vmem:[#allocation3 + $0x98] sm:$0xff]  ;;  %v848_v17 = vadd.f32 %v845_v14, %v2154_v10 }
 0x392   :  { %v721_v23 = vadd.f32 %v720_v20, %v618_v11  ;;  %v849_v20 = vadd.f32 %v846_v16, %v2155_v18  ;;  %v963_v16 = vld [vmem:[#allocation3 + $0xb8] sm:$0xff] }
 0x394   :  { %1193 = vtanh.f32 %v721_v23 }
 0x39a   :  { %v1194_v30 = vpop.eup %1193 }
 0x39b   :  { %v723_v33 = vsub.f32 %v1971_v36, %v1194_v30  ;;  %v730_v36 = vld [vmem:[#allocation3 + $0x80] sm:$0xff] }
 0x39d   :  { %v724_v40 = vmul.f32 %v723_v33, %v717_v37 }
 0x39f   :  { %v2038_v52 = vadd.f32 %v1194_v30, %v724_v40 }
 0x3a1   :  { %727 = vst [vmem:[#allocation11 + $0x20] sm:$0xff] %v2038_v52  ;;  %751 = vmatmul.f32.vlgmr.msrb.gmra.mxu3 %v2038_v52  ;;  %771 = vmatmul.f32.vlgmr.msra.gmra.mxu0 %v2038_v52 }
 0x3a2   :  { %791 = vmatmul.f32.vlgmr.msra.gmra.mxu1 %v2038_v52  ;;  %1007 = vmatpush.msrb.mxu3 %v1977_v38  ;;  %v733_v38 = vadd.f32 %v730_v36, %v2155_v18 }
 0x3a4   :  { %1008 = vmatpush.msrb.mxu3 %v1982_v53 }
 0x3a6   :  { %1009 = vmatpush.msrb.mxu3 %v1987_v35  ;;  %v729_v35 = vld [vmem:[#allocation3 + $0x78] sm:$0xff] }
 0x3a8   :  { %1010 = vmatpush.msrb.mxu3 %v1992_v50 }
 0x3aa   :  { %1011 = vmatpush.msrb.mxu3 %v1997_v43  ;;  %v732_v43 = vadd.f32 %v729_v35, %v2154_v10 }
 0x3ac   :  { %1012 = vmatpush.msrb.mxu3 %v2000_v39 }
 0x3ae   :  { %1013 = vmatpush.msrb.mxu3 %v2003_v46 }
 0x3b0   :  { %1014 = vmatpush.msrb.mxu3 %v2006_v13 }
 0x3b2   :  { %1015 = vmatpush.msrb.mxu3 %v2009_v9 }
 0x3b4   :  { %1016 = vmatpush.msrb.mxu3 %v2012_v15 }
 0x3b6   :  { %1017 = vmatpush.msrb.mxu3 %v2015_v19 }
 0x3b8   :  { %1018 = vmatpush.msrb.mxu3 %v2018_v22 }
 0x3ba   :  { %1019 = vmatpush.msrb.mxu3 %v2021_v25 }
 0x3bc   :  { %1020 = vmatpush.msrb.mxu3 %v2024_v28 }
 0x3be   :  { %1021 = vmatpush.msrb.mxu3 %v2027_v31 }
 0x3c0   :  { %1022 = vmatpush.msrb.mxu3 %v2030_v34 }
 0x41e   :  { %v772_v53 = vpop.f32.mrf.mxu0 }
 0x41f   :  { %v815_v50 = vadd.f32 %v772_v53, %v733_v38  ;;  %v792_v3 = vpop.f32.mrf.mxu1 }
 0x420   :  { %v835_v56 = vadd.f32 %v2065_v55, %v792_v3 }
 0x421   :  { %v1129_v39 = vmul.f32 -1.442695, %v815_v50 }
 0x423   :  { %1195 = vpow2.f32 %v1129_v39 }
 0x424   :  { %v752_v46 = vpop.f32.mrf.mxu3 }
 0x425   :  { %v795_v13 = vadd.f32 %v752_v46, %v732_v43  ;;  %v847_v46 = vld [vmem:[#allocation3 + $0xa0] sm:$0xff] }
 0x427   :  { %v1128_v9 = vmul.f32 -1.442695, %v795_v13 }
 0x429   :  { %1197 = vpow2.f32 %v1128_v9  ;;  %v1196_v15 = vpop.eup %1195 }
 0x42a   :  { %v819_v22 = vadd.f32 1.0, %v1196_v15 }
 0x42c   :  { %v831_v58 = vand.u32 2147483648, %v819_v22  ;;  %vm825_vm13 = vweird.f32 %v819_v22  ;;  %v829_v54 = vand.u32 2147483647, %v819_v22 }
 0x42e   :  { %v832_v12 = vor.u32 1.1754944e-38, %v831_v58  ;;  %vm830_vm15 = vcmp.eq.f32.partialorder %v829_v54, 8.507059e+37 }
 0x42f   :  { %v1198_v19 = vpop.eup %1197 }
 0x430   :  { %v799_v25 = vadd.f32 1.0, %v1198_v19 }
 0x432   :  { %1199 = vrcp.f32 %v799_v25  ;;  %v811_v0 = vand.u32 2147483648, %v799_v25  ;;  %v809_v2 = vand.u32 2147483647, %v799_v25  ;;  %vm805_vm9 = vweird.f32 %v799_v25 }
 0x433   :  { %1201 = vrcp.f32 %v819_v22 }
 0x434   :  { %v812_v7 = vor.u32 1.1754944e-38, %v811_v0  ;;  %vm810_vm11 = vcmp.eq.f32.partialorder %v809_v2, 8.507059e+37 }
 0x438   :  { %v1200_v28 = vpop.eup %1199 }
 0x439   :  { %v1202_v31 = vpop.eup %1201  ;;  %v801_v34 = vmul.f32 %v1200_v28, %v799_v25  ;;  %vm806_vm8 = vweird.f32 %v1200_v28  ;;  %v850_v25 = vadd.f32 %v847_v46, %v1773_v57 }
 0x43a   :  { %v821_v45 = vmul.f32 %v1202_v31, %v819_v22  ;;  %vm807_vm10 = vmor %vm805_vm9, %vm806_vm8  ;;  %vm826_vm12 = vweird.f32 %v1202_v31 }
 0x43b   :  { %v802_v44 = vsub.f32 1.0, %v801_v34  ;;  %vm827_vm14 = vmor %vm825_vm13, %vm826_vm12 }
 0x43c   :  { %v822_v6 = vsub.f32 1.0, %v821_v45 }
 0x43d   :  { %v803_v1 = vmul.f32 %v1200_v28, %v802_v44 }
 0x43e   :  { %v823_v62 = vmul.f32 %v1202_v31, %v822_v6 }
 0x43f   :  { %v804_v5 = vadd.f32 %v1200_v28, %v803_v1 }
 0x440   :  { %v824_v49 = vadd.f32 %v1202_v31, %v823_v62 }
 0x441   :  { %v808_v47 = vsel %vm807_vm10, %v1200_v28, %v804_v5 }
 0x442   :  { %v813_v48 = vsel %vm810_vm11, %v812_v7, %v808_v47  ;;  %v828_v59 = vsel %vm827_vm14, %v1202_v31, %v824_v49  ;;  %v961_v47 = vld [vmem:[#allocation3 + $0xa8] sm:$0xff] }
 0x443   :  { %v836_v61 = vmul.f32 %v835_v56, %v813_v48  ;;  %v833_v63 = vsel %vm830_vm15, %v832_v12, %v828_v59 }
 0x445   :  { %v837_v51 = vadd.f32 %v836_v61, %v734_v60  ;;  %v964_v60 = vadd.f32 %v961_v47, %v2154_v10  ;;  %v962_v61 = vld [vmem:[#allocation3 + $0xb0] sm:$0xff] }
 0x446   :  { %v965_v49 = vadd.f32 %v962_v61, %v2155_v18 }
 0x447   :  { %1203 = vtanh.f32 %v837_v51 }
 0x44d   :  { %v1204_v42 = vpop.eup %1203 }
 0x44e   :  { %v839_v41 = vsub.f32 %v2038_v52, %v1204_v42 }
 0x450   :  { %v840_v8 = vmul.f32 %v839_v41, %v833_v63 }
 0x452   :  { %v841_v11 = vadd.f32 %v1204_v42, %v840_v8 }
 0x454   :  { %843 = vst [vmem:[#allocation11 + $0x28] sm:$0xff] %v841_v11  ;;  %867 = vmatmul.f32.vlgmr.msra.gmra.mxu2 %v841_v11  ;;  %887 = vmatmul.f32.vlgmr.msra.gmra.mxu3 %v841_v11 }
 0x455   :  { %907 = vmatmul.f32.vlgmr.msrb.gmra.mxu0 %v841_v11 }
 0x4d2   :  { %v908_v39 = vpop.f32.mrf.mxu0 }
 0x4d3   :  { %v951_v19 = vadd.f32 %v2065_v55, %v908_v39 }
 0x4d7   :  { %v868_v21 = vpop.f32.mrf.mxu2  ;;  %v888_v23 = vpop.f32.mrf.mxu3 }
 0x4d8   :  { %v911_v24 = vadd.f32 %v868_v21, %v848_v17  ;;  %v931_v26 = vadd.f32 %v888_v23, %v849_v20 }
 0x4da   :  { %v1130_v27 = vmul.f32 -1.442695, %v911_v24  ;;  %v1131_v29 = vmul.f32 -1.442695, %v931_v26  ;;  %v966_v26 = vadd.f32 %v963_v16, %v1773_v57 }
 0x4dc   :  { %1205 = vpow2.f32 %v1130_v27 }
 0x4dd   :  { %1207 = vpow2.f32 %v1131_v29 }
 0x4e2   :  { %v1206_v30 = vpop.eup %1205 }
 0x4e3   :  { %v1208_v32 = vpop.eup %1207  ;;  %v915_v33 = vadd.f32 1.0, %v1206_v30 }
 0x4e4   :  { %v935_v37 = vadd.f32 1.0, %v1208_v32 }
 0x4e5   :  { %1209 = vrcp.f32 %v915_v33  ;;  %v927_v53 = vand.u32 2147483648, %v915_v33  ;;  %v925_v43 = vand.u32 2147483647, %v915_v33  ;;  %vm921_vm1 = vweird.f32 %v915_v33 }
 0x4e6   :  { %1211 = vrcp.f32 %v935_v37  ;;  %v947_v0 = vand.u32 2147483648, %v935_v37  ;;  %vm941_vm5 = vweird.f32 %v935_v37  ;;  %v945_v1 = vand.u32 2147483647, %v935_v37 }
 0x4e7   :  { %v928_v9 = vor.u32 1.1754944e-38, %v927_v53  ;;  %vm926_vm3 = vcmp.eq.f32.partialorder %v925_v43, 8.507059e+37 }
 0x4e8   :  { %v948_v4 = vor.u32 1.1754944e-38, %v947_v0  ;;  %vm946_vm7 = vcmp.eq.f32.partialorder %v945_v1, 8.507059e+37 }
 0x4eb   :  { %v1210_v40 = vpop.eup %1209 }
 0x4ec   :  { %v1212_v52 = vpop.eup %1211  ;;  %v917_v36 = vmul.f32 %v1210_v40, %v915_v33  ;;  %vm922_vm0 = vweird.f32 %v1210_v40 }
 0x4ed   :  { %v937_v35 = vmul.f32 %v1212_v52, %v935_v37  ;;  %vm923_vm2 = vmor %vm921_vm1, %vm922_vm0  ;;  %vm942_vm4 = vweird.f32 %v1212_v52 }
 0x4ee   :  { %v918_v38 = vsub.f32 1.0, %v917_v36  ;;  %vm943_vm6 = vmor %vm941_vm5, %vm942_vm4 }
 0x4ef   :  { %v938_v15 = vsub.f32 1.0, %v937_v35 }
 0x4f0   :  { %v919_v50 = vmul.f32 %v1210_v40, %v918_v38 }
 0x4f1   :  { %v939_v34 = vmul.f32 %v1212_v52, %v938_v15 }
 0x4f2   :  { %v920_v13 = vadd.f32 %v1210_v40, %v919_v50 }
 0x4f3   :  { %v940_v45 = vadd.f32 %v1212_v52, %v939_v34 }
 0x4f4   :  { %v924_v22 = vsel %vm923_vm2, %v1210_v40, %v920_v13 }
 0x4f5   :  { %v929_v28 = vsel %vm926_vm3, %v928_v9, %v924_v22  ;;  %v944_v2 = vsel %vm943_vm6, %v1212_v52, %v940_v45 }
 0x4f6   :  { %v952_v31 = vmul.f32 %v951_v19, %v929_v28  ;;  %v949_v6 = vsel %vm946_vm7, %v948_v4, %v944_v2 }
 0x4f8   :  { %v953_v44 = vadd.f32 %v952_v31, %v850_v25 }
 0x4fa   :  { %1213 = vtanh.f32 %v953_v44 }
 0x500   :  { %v1214_v3 = vpop.eup %1213 }
 0x501   :  { %v955_v5 = vsub.f32 %v841_v11, %v1214_v3 }
 0x503   :  { %v956_v7 = vmul.f32 %v955_v5, %v949_v6 }
 0x505   :  { %v2074_v56 = vadd.f32 %v1214_v3, %v956_v7 }
 0x507   :  { %959 = vst [vmem:[#allocation11 + $0x30] sm:$0xff] %v2074_v56  ;;  %983 = vmatmul.f32.vlgmr.msrb.gmra.mxu1 %v2074_v56  ;;  %1003 = vmatmul.f32.vlgmr.msrb.gmra.mxu2 %v2074_v56 }
 0x508   :  { %1023 = vmatmul.f32.vlgmr.msrb.gmra.mxu3 %v2074_v56 }
 0x584   :  { %v984_v48 = vpop.f32.mrf.mxu1 }
 0x585   :  { %v1027_v62 = vadd.f32 %v984_v48, %v964_v60 }
 0x587   :  { %v1132_v51 = vmul.f32 -1.442695, %v1027_v62 }
 0x589   :  { %1215 = vpow2.f32 %v1132_v51 }
 0x58a   :  { %v1004_v58 = vpop.f32.mrf.mxu2 }
 0x58b   :  { %v1047_v54 = vadd.f32 %v1004_v58, %v965_v49  ;;  %v1024_v21 = vpop.f32.mrf.mxu3 }
 0x58c   :  { %v1067_v32 = vadd.f32 %v2065_v55, %v1024_v21 }
 0x58d   :  { %v1133_v59 = vmul.f32 -1.442695, %v1047_v54 }
 0x58f   :  { %v1216_v42 = vpop.eup %1215  ;;  %1217 = vpow2.f32 %v1133_v59 }
 0x590   :  { %v1031_v12 = vadd.f32 1.0, %v1216_v42 }
 0x592   :  { %1219 = vrcp.f32 %v1031_v12  ;;  %v1043_v14 = vand.u32 2147483648, %v1031_v12  ;;  %v1041_v20 = vand.u32 2147483647, %v1031_v12  ;;  %vm1037_vm9 = vweird.f32 %v1031_v12 }
 0x594   :  { %v1044_v27 = vor.u32 1.1754944e-38, %v1043_v14  ;;  %vm1042_vm11 = vcmp.eq.f32.partialorder %v1041_v20, 8.507059e+37 }
 0x595   :  { %v1218_v41 = vpop.eup %1217 }
 0x596   :  { %v1051_v63 = vadd.f32 1.0, %v1218_v41 }
 0x598   :  { %v1220_v8 = vpop.eup %1219  ;;  %1221 = vrcp.f32 %v1051_v63  ;;  %v1063_v38 = vand.u32 2147483648, %v1051_v63  ;;  %vm1057_vm13 = vweird.f32 %v1051_v63  ;;  %v1061_v53 = vand.u32 2147483647, %v1051_v63 }
 0x599   :  { %v1033_v11 = vmul.f32 %v1220_v8, %v1031_v12  ;;  %vm1038_vm8 = vweird.f32 %v1220_v8 }
 0x59a   :  { %vm1039_vm10 = vmor %vm1037_vm9, %vm1038_vm8  ;;  %v1064_v50 = vor.u32 1.1754944e-38, %v1063_v38  ;;  %vm1062_vm15 = vcmp.eq.f32.partialorder %v1061_v53, 8.507059e+37 }
 0x59b   :  { %v1034_v10 = vsub.f32 1.0, %v1033_v11 }
 0x59d   :  { %v1035_v17 = vmul.f32 %v1220_v8, %v1034_v10 }
 0x59e   :  { %v1222_v18 = vpop.eup %1221 }
 0x59f   :  { %v1053_v23 = vmul.f32 %v1222_v18, %v1051_v63  ;;  %v1036_v24 = vadd.f32 %v1220_v8, %v1035_v17  ;;  %vm1058_vm12 = vweird.f32 %v1222_v18 }
 0x5a0   :  { %vm1059_vm14 = vmor %vm1057_vm13, %vm1058_vm12 }
 0x5a1   :  { %v1054_v29 = vsub.f32 1.0, %v1053_v23  ;;  %v1040_v30 = vsel %vm1039_vm10, %v1220_v8, %v1036_v24 }
 0x5a2   :  { %v1045_v33 = vsel %vm1042_vm11, %v1044_v27, %v1040_v30 }
 0x5a3   :  { %v1068_v37 = vmul.f32 %v1067_v32, %v1045_v33  ;;  %v1055_v40 = vmul.f32 %v1222_v18, %v1054_v29 }
 0x5a5   :  { %v1069_v52 = vadd.f32 %v1068_v37, %v966_v26  ;;  %v1056_v36 = vadd.f32 %v1222_v18, %v1055_v40 }
 0x5a7   :  { %1223 = vtanh.f32 %v1069_v52  ;;  %v1060_v35 = vsel %vm1059_vm14, %v1222_v18, %v1056_v36 }
 0x5a8   :  { %v1065_v55 = vsel %vm1062_vm15, %v1064_v50, %v1060_v35 }
 0x5ad   :  { %v1224_v57 = vpop.eup %1223 }
 0x5ae   :  { %v1071_v43 = vsub.f32 %v2074_v56, %v1224_v57 }
 0x5b0   :  { %v1072_v39 = vmul.f32 %v1071_v43, %v1065_v55 }
 0x5b2   :  { %v1073_v46 = vadd.f32 %v1224_v57, %v1072_v39 }
 0x5b4   :  { %1075 = vst [vmem:[#allocation11 + $0x38] sm:$0xff] %v1073_v46 }
 0x5b5   :  { %1080 = vst [vmem:[#allocation12] sm:$0xff] %v1073_v46  ;;  %1093 = dma.vmem_to_hbm [thread:$0]  %s1086_s19, 1024, %s1088_s22, [#allocation5], %s1436_s28, %s1436_s28, %s1437_s29  }
 0x5b6   :  { %1104 = dma.vmem_to_hbm [thread:$0]  %s1100_s24, 128, %s1102_s27, [#allocation13]  }
 0x5b7   :  { %1424 = dma.done.wait [#allocation5], 1024  }
 0x5b8   :  { %1425 = vsyncadd [#allocation5], 4294966272 }
 0x5b9   :  { %1426 = dma.done.wait [#allocation13], 128  }
 0x5ba   :  { %1427 = vsyncadd [#allocation13], 4294967168 }
 0x5bb   :  { %1113 = vsyncpa [#allocation4], 1 }
 0x5bc   :  { %1114 = vsyncpa [#allocation7], 1 }
 0x5bd   :  { %1115 = vsyncpa [#allocation10], 1 }
 0x5be   :  { %1116 = vsyncpa [#allocation5], 1 }
 0x5bf   :  { %1117 = vsyncpa [#allocation13], 1 }

</bundles_post_ra>
